<compile_context>
chip_gen: v7x
topology: tpu7x:2x2x1
jax: 0.10.0
libtpu: 0.0.40
codegen_flags: <defaults>
</compile_context>

<pallas_src>
import functools
import math

import numpy as np
import jax
import jax.numpy as jnp
from jax.experimental import pallas as pl
from jax.experimental.pallas import tpu as pltpu


# ----------------------------------------------------------------------------
# Fused EncoderLayer kernel (one program per batch element)
# ----------------------------------------------------------------------------

def _encoder_layer_kernel(x_ref, mask_ref, pos_ref,
                          wqkv_ref, wo_ref,
                          ln1_g_ref, ln1_b_ref,
                          w1_ref, b1_ref, w2_ref, b2_ref,
                          ln2_g_ref, ln2_b_ref,
                          o_ref, *, heads, inv_scale, eps, mm_dtype):
    f32 = jnp.float32
    x = x_ref[0]                                   # (T, D) f32
    T, D = x.shape
    H = heads
    Dh = D // H

    # ---- fused Q/K/V projection: one MXU matmul, bf16 in / f32 accumulate ----
    qkv = jnp.dot(x.astype(mm_dtype), wqkv_ref[...],
                  preferred_element_type=f32)      # (T, 3D)
    q = qkv[:, :D]
    k = qkv[:, D:2 * D]
    v = qkv[:, 2 * D:]

    qm = q.astype(mm_dtype)
    km = k.astype(mm_dtype)
    vm = v.astype(mm_dtype)

    # ---- relative-position logits for ALL heads at once, on the MXU --------
    # pos_ref: (Tq, Tk, Dh) shared across the batch (constant index_map).
    pos = pos_ref[...]                              # (T, T, Dh) bf16
    q3 = q.reshape(T, H, Dh).astype(mm_dtype)       # (T, H, Dh)
    pos_logits = jnp.einsum('qhd,qkd->qhk', q3, pos,
                            preferred_element_type=f32)   # (T, H, T)

    # ---- padding mask: (1, Tk), broadcast over heads/queries in-register ----
    mask_row = mask_ref[0]                          # (1, T) f32, 1.0 => masked

    # ---- per-head attention (2-D MXU matmuls) -------------------------------
    ctx_parts = []
    for h in range(H):
        sl = slice(h * Dh, (h + 1) * Dh)
        qh = qm[:, sl]                              # (T, Dh)
        kh = km[:, sl]
        vh = vm[:, sl]

        logits = jax.lax.dot_general(
            qh, kh, (((1,), (1,)), ((), ())),
            preferred_element_type=f32)             # (T, T) = Q Kt
        logits = (logits + pos_logits[:, h, :]) * inv_scale
        logits = jnp.where(mask_row > 0.0, -1e30, logits)

        row_max = jnp.max(logits, axis=-1, keepdims=True)
        e = jnp.exp(logits - row_max)
        denom = jnp.sum(e, axis=-1, keepdims=True)
        p = e * pl.reciprocal(denom, approx=True)   # EUP reciprocal (free slot)

        ctx_parts.append(jnp.dot(p.astype(mm_dtype), vh,
                                 preferred_element_type=f32))   # (T, Dh)

    heads_concat = jnp.concatenate(ctx_parts, axis=-1)          # (T, D)
    attn = jnp.dot(heads_concat.astype(mm_dtype), wo_ref[...],
                   preferred_element_type=f32)                  # (T, D)

    # ---- residual + LayerNorm, fused (no HBM round trips) -------------------
    def layer_norm(y, g_ref, b_ref):
        mu = jnp.mean(y, axis=-1, keepdims=True)
        var = jnp.mean(jnp.square(y - mu), axis=-1, keepdims=True)
        return (y - mu) * jax.lax.rsqrt(var + eps) * g_ref[...] + b_ref[...]

    x1 = layer_norm(x + attn, ln1_g_ref, ln1_b_ref)

    # ---- dense sublayer: D -> 4D (ReLU) -> D, residual + LayerNorm 2 --------
    h1 = jnp.dot(x1.astype(mm_dtype), w1_ref[...], preferred_element_type=f32)
    h1 = jnp.maximum(h1 + b1_ref[...], 0.0)
    h2 = jnp.dot(h1.astype(mm_dtype), w2_ref[...], preferred_element_type=f32)
    h2 = h2 + b2_ref[...]

    o_ref[0] = layer_norm(x1 + h2, ln2_g_ref, ln2_b_ref)


def encoder_layer_forward(params, x, mask):
    """Fused EncoderLayer forward.

    x:    (B, T, D) float32
    mask: (B, 1, 1, T) bool/float, truthy => masked (padding) key position
    returns (B, T, D) float32
    """
    x = jnp.asarray(x, jnp.float32)
    B, T, D = x.shape
    H = params["heads"]
    Dh = D // H
    L = params["max_pos_len"]
    mm = jnp.bfloat16

    # Relative-position table (index glue, done once on host / in XLA):
    #   idx[q, k] = clip(k - q, -L, L) + L   ->   pos[q, k, :] = emb[idx[q, k]]
    idx = np.clip(np.arange(T)[None, :] - np.arange(T)[:, None], -L, L) + L
    pos = jnp.asarray(params["pos_embedding"], jnp.float32)[idx].astype(mm)

    mask_f = jnp.asarray(mask, jnp.float32).reshape(B, 1, T)   # un-broadcast

    wqkv = jnp.asarray(params["wqkv"], jnp.float32).astype(mm)     # (D, 3D)
    wo = jnp.asarray(params["wo"], jnp.float32).astype(mm)         # (D, D)
    w1 = jnp.asarray(params["w1"], jnp.float32).astype(mm)         # (D, 4D)
    w2 = jnp.asarray(params["w2"], jnp.float32).astype(mm)         # (4D, D)
    b1 = jnp.asarray(params["b1"], jnp.float32).reshape(1, 4 * D)
    b2 = jnp.asarray(params["b2"], jnp.float32).reshape(1, D)
    ln1_g = jnp.asarray(params["ln1_g"], jnp.float32).reshape(1, D)
    ln1_b = jnp.asarray(params["ln1_b"], jnp.float32).reshape(1, D)
    ln2_g = jnp.asarray(params["ln2_g"], jnp.float32).reshape(1, D)
    ln2_b = jnp.asarray(params["ln2_b"], jnp.float32).reshape(1, D)

    kern = functools.partial(
        _encoder_layer_kernel, heads=H,
        inv_scale=float(1.0 / params["scale"]), eps=1e-5, mm_dtype=mm)

    const2 = lambda b: (0, 0)
    const3 = lambda b: (0, 0, 0)

    return pl.pallas_call(
        kern,
        out_shape=jax.ShapeDtypeStruct((B, T, D), jnp.float32),
        grid=(B,),
        in_specs=[
            pl.BlockSpec((1, T, D), lambda b: (b, 0, 0)),   # x
            pl.BlockSpec((1, 1, T), lambda b: (b, 0, 0)),   # mask (un-broadcast)
            pl.BlockSpec((T, T, Dh), const3),               # pos table (shared)
            pl.BlockSpec((D, 3 * D), const2),               # fused Wqkv
            pl.BlockSpec((D, D), const2),                   # Wo
            pl.BlockSpec((1, D), const2),                   # LN1 gamma
            pl.BlockSpec((1, D), const2),                   # LN1 beta
            pl.BlockSpec((D, 4 * D), const2),               # FFN W1
            pl.BlockSpec((1, 4 * D), const2),               # FFN b1
            pl.BlockSpec((4 * D, D), const2),               # FFN W2
            pl.BlockSpec((1, D), const2),                   # FFN b2
            pl.BlockSpec((1, D), const2),                   # LN2 gamma
            pl.BlockSpec((1, D), const2),                   # LN2 beta
        ],
        out_specs=pl.BlockSpec((1, T, D), lambda b: (b, 0, 0)),
        compiler_params=pltpu.CompilerParams(
            dimension_semantics=("parallel",),
            vmem_limit_bytes=32 * 1024 * 1024),
    )(x, mask_f, pos, wqkv, wo, ln1_g, ln1_b, w1, b1, w2, b2, ln2_g, ln2_b)


# ----------------------------------------------------------------------------
# Pure-JAX reference (same bf16-matmul / f32-accumulate policy as the kernel)
# ----------------------------------------------------------------------------

def _ref_layernorm(y, g, b, eps=1e-5):
    mu = jnp.mean(y, axis=-1, keepdims=True)
    var = jnp.mean(jnp.square(y - mu), axis=-1, keepdims=True)
    return (y - mu) * jax.lax.rsqrt(var + eps) * g + b


def encoder_layer_reference(p, x, mask):
    f32, mm = jnp.float32, jnp.bfloat16
    x = jnp.asarray(x, f32)
    B, T, D = x.shape
    H = p["heads"]
    Dh = D // H
    L = p["max_pos_len"]

    idx = jnp.clip(jnp.arange(T)[None, :] - jnp.arange(T)[:, None], -L, L) + L
    pos = jnp.asarray(p["pos_embedding"], f32)[idx].astype(mm)    # (T,T,Dh)

    def mdot(a, b):
        return jnp.einsum('...ij,jk->...ik', a.astype(mm), b.astype(mm),
                          preferred_element_type=f32)

    qkv = mdot(x, p["wqkv"])
    q, k, v = qkv[..., :D], qkv[..., D:2 * D], qkv[..., 2 * D:]

    def split(t):                                   # (B,T,D) -> (B,H,T,Dh)
        return t.reshape(B, T, H, Dh).transpose(0, 2, 1, 3)

    q4, k4, v4 = split(q).astype(mm), split(k).astype(mm), split(v).astype(mm)

    logits = jnp.einsum('bhqd,bhkd->bhqk', q4, k4, preferred_element_type=f32)
    pos_l = jnp.einsum('bhqd,qkd->bhqk', q4, pos, preferred_element_type=f32)
    logits = (logits + pos_l) / p["scale"]
    logits = jnp.where(jnp.asarray(mask, bool), -1e30, logits)
    probs = jax.nn.softmax(logits, axis=-1)
    ctx = jnp.einsum('bhqk,bhkd->bhqd', probs.astype(mm), v4,
                     preferred_element_type=f32)
    heads = ctx.transpose(0, 2, 1, 3).reshape(B, T, D)
    attn = mdot(heads, p["wo"])

    x1 = _ref_layernorm(x + attn, p["ln1_g"], p["ln1_b"])
    h = jnp.maximum(mdot(x1, p["w1"]) + p["b1"], 0.0)
    h = mdot(h, p["w2"]) + p["b2"]
    return _ref_layernorm(x1 + h, p["ln2_g"], p["ln2_b"])


# ----------------------------------------------------------------------------
# Deterministic parameter construction
# ----------------------------------------------------------------------------

def init_encoder_layer_params(key, dim, heads, max_pos_len):
    # Weights are stored (in, out) and applied as x @ W (functionally
    # equivalent to PyTorch's nn.Linear x @ W.T parameterization).
    D = dim
    ks = jax.random.split(key, 7)

    def lin(k, i, o, std=0.08):
        return jax.random.normal(k, (i, o), jnp.float32) * std

    wq = lin(ks[0], D, D)
    wk = lin(ks[1], D, D)
    wv = lin(ks[2], D, D)
    return dict(
        dim=D, heads=heads, max_pos_len=max_pos_len,
        scale=math.sqrt(D / heads),
        pos_embedding=jax.random.normal(
            ks[3], (2 * max_pos_len + 1, D // heads), jnp.float32) * 0.1,
        wqkv=jnp.concatenate([wq, wk, wv], axis=1),      # fused (D, 3D)
        wo=lin(ks[4], D, D),
        ln1_g=jnp.ones((D,), jnp.float32),
        ln1_b=jnp.zeros((D,), jnp.float32),
        # PositionLinear: std=0.015, zero bias (faithful to the reference).
        w1=jax.random.normal(ks[5], (D, 4 * D), jnp.float32) * 0.015,
        b1=jnp.zeros((4 * D,), jnp.float32),
        w2=jax.random.normal(ks[6], (4 * D, D), jnp.float32) * 0.015,
        b2=jnp.zeros((D,), jnp.float32),
        ln2_g=jnp.ones((D,), jnp.float32),
        ln2_b=jnp.zeros((D,), jnp.float32),
    )


# ----------------------------------------------------------------------------
# Main: deterministic small-shape example
# ----------------------------------------------------------------------------

if __name__ == "__main__":
    B, T, D, H, MAX_POS_LEN = 2, 16, 32, 4, 8

    key = jax.random.PRNGKey(0)
    k_params, k_x = jax.random.split(key)
    params = init_encoder_layer_params(k_params, D, H, MAX_POS_LEN)

    x = jax.random.normal(k_x, (B, T, D), jnp.float32)

    # Padding mask (B, 1, 1, T): True => masked key position.
    lengths = np.array([16, 12], dtype=np.int32)
    pad = np.arange(T)[None, :] >= lengths[:, None]          # (B, T)
    mask = jnp.asarray(pad)[:, None, None, :]                # (B, 1, 1, T)

    out = encoder_layer_forward(params, x, mask)
    out = jax.block_until_ready(out)

    ref = jax.block_until_ready(encoder_layer_reference(params, x, mask))

    assert out.shape == (B, T, D)
    assert np.all(np.isfinite(np.asarray(out)))
    np.testing.assert_allclose(np.asarray(out), np.asarray(ref),
                               rtol=5e-2, atol=5e-2)
    print("KERNEL_OK")
</pallas_src>

<mosaic_0001>
module attributes {stable_mosaic.version = 11 : i64} {
  func.func @_encoder_layer_kernel(%arg0: i32, %arg1: memref<1x16x32xf32, #tpu.memory_space<vmem>>, %arg2: memref<1x1x16xf32, #tpu.memory_space<vmem>>, %arg3: memref<16x16x8xbf16, #tpu.memory_space<vmem>>, %arg4: memref<32x96xbf16, #tpu.memory_space<vmem>>, %arg5: memref<32x32xbf16, #tpu.memory_space<vmem>>, %arg6: memref<1x32xf32, #tpu.memory_space<vmem>>, %arg7: memref<1x32xf32, #tpu.memory_space<vmem>>, %arg8: memref<32x128xbf16, #tpu.memory_space<vmem>>, %arg9: memref<1x128xf32, #tpu.memory_space<vmem>>, %arg10: memref<128x32xbf16, #tpu.memory_space<vmem>>, %arg11: memref<1x32xf32, #tpu.memory_space<vmem>>, %arg12: memref<1x32xf32, #tpu.memory_space<vmem>>, %arg13: memref<1x32xf32, #tpu.memory_space<vmem>>, %arg14: memref<1x16x32xf32, #tpu.memory_space<vmem>>) attributes {dimension_semantics = [#tpu.dimension_semantics<parallel>], iteration_bounds = array<i64: 2>, scalar_prefetch = 0 : i64, scratch_operands = 0 : i64, tpu.core_type = #tpu.core_type<tc>, window_params = [{transform_indices = @transform_0, window_bounds = array<i64: 1, 16, 32>}, {transform_indices = @transform_1, window_bounds = array<i64: 1, 1, 16>}, {pipeline_mode = #tpu.pipeline_mode<synchronous>, transform_indices = @transform_2, window_bounds = array<i64: 16, 16, 8>}, {pipeline_mode = #tpu.pipeline_mode<synchronous>, transform_indices = @transform_3, window_bounds = array<i64: 32, 96>}, {pipeline_mode = #tpu.pipeline_mode<synchronous>, transform_indices = @transform_4, window_bounds = array<i64: 32, 32>}, {pipeline_mode = #tpu.pipeline_mode<synchronous>, transform_indices = @transform_5, window_bounds = array<i64: 1, 32>}, {pipeline_mode = #tpu.pipeline_mode<synchronous>, transform_indices = @transform_6, window_bounds = array<i64: 1, 32>}, {pipeline_mode = #tpu.pipeline_mode<synchronous>, transform_indices = @transform_7, window_bounds = array<i64: 32, 128>}, {pipeline_mode = #tpu.pipeline_mode<synchronous>, transform_indices = @transform_8, window_bounds = array<i64: 1, 128>}, {pipeline_mode = #tpu.pipeline_mode<synchronous>, transform_indices = @transform_9, window_bounds = array<i64: 128, 32>}, {pipeline_mode = #tpu.pipeline_mode<synchronous>, transform_indices = @transform_10, window_bounds = array<i64: 1, 32>}, {pipeline_mode = #tpu.pipeline_mode<synchronous>, transform_indices = @transform_11, window_bounds = array<i64: 1, 32>}, {pipeline_mode = #tpu.pipeline_mode<synchronous>, transform_indices = @transform_12, window_bounds = array<i64: 1, 32>}, {transform_indices = @transform_13, window_bounds = array<i64: 1, 16, 32>}]} {
    %c0 = arith.constant 0 : index
    %c0_0 = arith.constant 0 : index
    %c0_1 = arith.constant 0 : index
    %0 = vector.load %arg1[%c0, %c0_0, %c0_1] : memref<1x16x32xf32, #tpu.memory_space<vmem>>, vector<1x16x32xf32>
    %1 = vector.shape_cast %0 : vector<1x16x32xf32> to vector<16x32xf32>
    %2 = arith.truncf %1 : vector<16x32xf32> to vector<16x32xbf16>
    %c0_2 = arith.constant 0 : index
    %c0_3 = arith.constant 0 : index
    %3 = vector.load %arg4[%c0_2, %c0_3] : memref<32x96xbf16, #tpu.memory_space<vmem>>, vector<32x96xbf16>
    %cst = arith.constant dense<0.000000e+00> : vector<16x96xf32>
    %4 = tpu.matmul %2, %3, %cst {dimension_numbers = #tpu.dot_dimension_numbers<[1], [0], [0], [1], [0, 0, 1, 1], [], []>} : vector<16x32xbf16>, vector<32x96xbf16>, vector<16x96xf32> -> vector<16x96xf32>
    %5 = vector.extract_strided_slice %4 {offsets = [0, 0], sizes = [16, 32], strides = [1, 1]} : vector<16x96xf32> to vector<16x32xf32>
    %6 = vector.extract_strided_slice %4 {offsets = [0, 32], sizes = [16, 32], strides = [1, 1]} : vector<16x96xf32> to vector<16x32xf32>
    %7 = vector.extract_strided_slice %4 {offsets = [0, 64], sizes = [16, 32], strides = [1, 1]} : vector<16x96xf32> to vector<16x32xf32>
    %8 = arith.truncf %5 : vector<16x32xf32> to vector<16x32xbf16>
    %9 = arith.truncf %6 : vector<16x32xf32> to vector<16x32xbf16>
    %10 = arith.truncf %7 : vector<16x32xf32> to vector<16x32xbf16>
    %c0_4 = arith.constant 0 : index
    %c0_5 = arith.constant 0 : index
    %c0_6 = arith.constant 0 : index
    %11 = vector.load %arg3[%c0_4, %c0_5, %c0_6] : memref<16x16x8xbf16, #tpu.memory_space<vmem>>, vector<16x16x8xbf16>
    %12 = vector.shape_cast %5 : vector<16x32xf32> to vector<16x4x8xf32>
    %13 = arith.truncf %12 : vector<16x4x8xf32> to vector<16x4x8xbf16>
    "tpu.trace_start"() <{level = 10 : i32, message = "qhd,qkd->qhk"}> : () -> ()
    %cst_7 = arith.constant dense<0.000000e+00> : vector<16x4x16xf32>
    %14 = tpu.matmul %13, %11, %cst_7 {dimension_numbers = #tpu.dot_dimension_numbers<[2], [2], [1], [1], [0, 0, 0, 1, 1, 1], [0], [0]>} : vector<16x4x8xbf16>, vector<16x16x8xbf16>, vector<16x4x16xf32> -> vector<16x4x16xf32>
    "tpu.trace_stop"() : () -> ()
    %c0_8 = arith.constant 0 : index
    %c0_9 = arith.constant 0 : index
    %c0_10 = arith.constant 0 : index
    %15 = vector.load %arg2[%c0_8, %c0_9, %c0_10] : memref<1x1x16xf32, #tpu.memory_space<vmem>>, vector<1x1x16xf32>
    %16 = vector.shape_cast %15 : vector<1x1x16xf32> to vector<1x16xf32>
    %17 = vector.extract_strided_slice %8 {offsets = [0, 0], sizes = [16, 8], strides = [1, 1]} : vector<16x32xbf16> to vector<16x8xbf16>
    %18 = vector.extract_strided_slice %9 {offsets = [0, 0], sizes = [16, 8], strides = [1, 1]} : vector<16x32xbf16> to vector<16x8xbf16>
    %19 = vector.extract_strided_slice %10 {offsets = [0, 0], sizes = [16, 8], strides = [1, 1]} : vector<16x32xbf16> to vector<16x8xbf16>
    %cst_11 = arith.constant dense<0.000000e+00> : vector<16x16xf32>
    %20 = tpu.matmul %17, %18, %cst_11 {dimension_numbers = #tpu.dot_dimension_numbers<[1], [1], [0], [0], [0, 0, 1, 0], [], []>} : vector<16x8xbf16>, vector<16x8xbf16>, vector<16x16xf32> -> vector<16x16xf32>
    %21 = vector.extract_strided_slice %14 {offsets = [0, 0, 0], sizes = [16, 1, 16], strides = [1, 1, 1]} : vector<16x4x16xf32> to vector<16x1x16xf32>
    %22 = vector.shape_cast %21 : vector<16x1x16xf32> to vector<16x16xf32>
    %23 = arith.addf %20, %22 : vector<16x16xf32>
    %cst_12 = arith.constant 0.353553385 : f32
    %24 = vector.broadcast %cst_12 : f32 to vector<16x16xf32>
    %25 = arith.mulf %23, %24 : vector<16x16xf32>
    %cst_13 = arith.constant 0.000000e+00 : f32
    %26 = vector.broadcast %cst_13 : f32 to vector<1x16xf32>
    %27 = arith.cmpf ogt, %16, %26 : vector<1x16xf32>
    %cst_14 = arith.constant -1.000000e+30 : f32
    %28 = vector.shape_cast %27 : vector<1x16xi1> to vector<1x16xi1>
    %29 = vector.broadcast %28 : vector<1x16xi1> to vector<16x16xi1>
    %30 = vector.broadcast %cst_14 : f32 to vector<16x16xf32>
    %31 = arith.select %29, %30, %25 : vector<16x16xi1>, vector<16x16xf32>
    %cst_15 = arith.constant dense<0xFF800000> : vector<16xf32>
    %32 = vector.multi_reduction <maximumf>, %31, %cst_15 [1] : vector<16x16xf32> to vector<16xf32>
    %33 = vector.shape_cast %32 : vector<16xf32> to vector<16x1xf32>
    %34 = vector.broadcast %33 : vector<16x1xf32> to vector<16x16xf32>
    %35 = arith.subf %31, %34 : vector<16x16xf32>
    %36 = math.exp %35 : vector<16x16xf32>
    %cst_16 = arith.constant dense<0.000000e+00> : vector<16xf32>
    %37 = vector.multi_reduction <add>, %36, %cst_16 [1] : vector<16x16xf32> to vector<16xf32>
    %38 = vector.shape_cast %37 : vector<16xf32> to vector<16x1xf32>
    %39 = tpu.reciprocal %38 {approx = true} : vector<16x1xf32> -> vector<16x1xf32>
    %40 = vector.broadcast %39 : vector<16x1xf32> to vector<16x16xf32>
    %41 = arith.mulf %36, %40 : vector<16x16xf32>
    %42 = arith.truncf %41 : vector<16x16xf32> to vector<16x16xbf16>
    %cst_17 = arith.constant dense<0.000000e+00> : vector<16x8xf32>
    %43 = tpu.matmul %42, %19, %cst_17 {dimension_numbers = #tpu.dot_dimension_numbers<[1], [0], [0], [1], [0, 0, 1, 1], [], []>} : vector<16x16xbf16>, vector<16x8xbf16>, vector<16x8xf32> -> vector<16x8xf32>
    %44 = vector.extract_strided_slice %8 {offsets = [0, 8], sizes = [16, 8], strides = [1, 1]} : vector<16x32xbf16> to vector<16x8xbf16>
    %45 = vector.extract_strided_slice %9 {offsets = [0, 8], sizes = [16, 8], strides = [1, 1]} : vector<16x32xbf16> to vector<16x8xbf16>
    %46 = vector.extract_strided_slice %10 {offsets = [0, 8], sizes = [16, 8], strides = [1, 1]} : vector<16x32xbf16> to vector<16x8xbf16>
    %cst_18 = arith.constant dense<0.000000e+00> : vector<16x16xf32>
    %47 = tpu.matmul %44, %45, %cst_18 {dimension_numbers = #tpu.dot_dimension_numbers<[1], [1], [0], [0], [0, 0, 1, 0], [], []>} : vector<16x8xbf16>, vector<16x8xbf16>, vector<16x16xf32> -> vector<16x16xf32>
    %48 = vector.extract_strided_slice %14 {offsets = [0, 1, 0], sizes = [16, 1, 16], strides = [1, 1, 1]} : vector<16x4x16xf32> to vector<16x1x16xf32>
    %49 = vector.shape_cast %48 : vector<16x1x16xf32> to vector<16x16xf32>
    %50 = arith.addf %47, %49 : vector<16x16xf32>
    %cst_19 = arith.constant 0.353553385 : f32
    %51 = vector.broadcast %cst_19 : f32 to vector<16x16xf32>
    %52 = arith.mulf %50, %51 : vector<16x16xf32>
    %cst_20 = arith.constant 0.000000e+00 : f32
    %53 = vector.broadcast %cst_20 : f32 to vector<1x16xf32>
    %54 = arith.cmpf ogt, %16, %53 : vector<1x16xf32>
    %cst_21 = arith.constant -1.000000e+30 : f32
    %55 = vector.shape_cast %54 : vector<1x16xi1> to vector<1x16xi1>
    %56 = vector.broadcast %55 : vector<1x16xi1> to vector<16x16xi1>
    %57 = vector.broadcast %cst_21 : f32 to vector<16x16xf32>
    %58 = arith.select %56, %57, %52 : vector<16x16xi1>, vector<16x16xf32>
    %cst_22 = arith.constant dense<0xFF800000> : vector<16xf32>
    %59 = vector.multi_reduction <maximumf>, %58, %cst_22 [1] : vector<16x16xf32> to vector<16xf32>
    %60 = vector.shape_cast %59 : vector<16xf32> to vector<16x1xf32>
    %61 = vector.broadcast %60 : vector<16x1xf32> to vector<16x16xf32>
    %62 = arith.subf %58, %61 : vector<16x16xf32>
    %63 = math.exp %62 : vector<16x16xf32>
    %cst_23 = arith.constant dense<0.000000e+00> : vector<16xf32>
    %64 = vector.multi_reduction <add>, %63, %cst_23 [1] : vector<16x16xf32> to vector<16xf32>
    %65 = vector.shape_cast %64 : vector<16xf32> to vector<16x1xf32>
    %66 = tpu.reciprocal %65 {approx = true} : vector<16x1xf32> -> vector<16x1xf32>
    %67 = vector.broadcast %66 : vector<16x1xf32> to vector<16x16xf32>
    %68 = arith.mulf %63, %67 : vector<16x16xf32>
    %69 = arith.truncf %68 : vector<16x16xf32> to vector<16x16xbf16>
    %cst_24 = arith.constant dense<0.000000e+00> : vector<16x8xf32>
    %70 = tpu.matmul %69, %46, %cst_24 {dimension_numbers = #tpu.dot_dimension_numbers<[1], [0], [0], [1], [0, 0, 1, 1], [], []>} : vector<16x16xbf16>, vector<16x8xbf16>, vector<16x8xf32> -> vector<16x8xf32>
    %71 = vector.extract_strided_slice %8 {offsets = [0, 16], sizes = [16, 8], strides = [1, 1]} : vector<16x32xbf16> to vector<16x8xbf16>
    %72 = vector.extract_strided_slice %9 {offsets = [0, 16], sizes = [16, 8], strides = [1, 1]} : vector<16x32xbf16> to vector<16x8xbf16>
    %73 = vector.extract_strided_slice %10 {offsets = [0, 16], sizes = [16, 8], strides = [1, 1]} : vector<16x32xbf16> to vector<16x8xbf16>
    %cst_25 = arith.constant dense<0.000000e+00> : vector<16x16xf32>
    %74 = tpu.matmul %71, %72, %cst_25 {dimension_numbers = #tpu.dot_dimension_numbers<[1], [1], [0], [0], [0, 0, 1, 0], [], []>} : vector<16x8xbf16>, vector<16x8xbf16>, vector<16x16xf32> -> vector<16x16xf32>
    %75 = vector.extract_strided_slice %14 {offsets = [0, 2, 0], sizes = [16, 1, 16], strides = [1, 1, 1]} : vector<16x4x16xf32> to vector<16x1x16xf32>
    %76 = vector.shape_cast %75 : vector<16x1x16xf32> to vector<16x16xf32>
    %77 = arith.addf %74, %76 : vector<16x16xf32>
    %cst_26 = arith.constant 0.353553385 : f32
    %78 = vector.broadcast %cst_26 : f32 to vector<16x16xf32>
    %79 = arith.mulf %77, %78 : vector<16x16xf32>
    %cst_27 = arith.constant 0.000000e+00 : f32
    %80 = vector.broadcast %cst_27 : f32 to vector<1x16xf32>
    %81 = arith.cmpf ogt, %16, %80 : vector<1x16xf32>
    %cst_28 = arith.constant -1.000000e+30 : f32
    %82 = vector.shape_cast %81 : vector<1x16xi1> to vector<1x16xi1>
    %83 = vector.broadcast %82 : vector<1x16xi1> to vector<16x16xi1>
    %84 = vector.broadcast %cst_28 : f32 to vector<16x16xf32>
    %85 = arith.select %83, %84, %79 : vector<16x16xi1>, vector<16x16xf32>
    %cst_29 = arith.constant dense<0xFF800000> : vector<16xf32>
    %86 = vector.multi_reduction <maximumf>, %85, %cst_29 [1] : vector<16x16xf32> to vector<16xf32>
    %87 = vector.shape_cast %86 : vector<16xf32> to vector<16x1xf32>
    %88 = vector.broadcast %87 : vector<16x1xf32> to vector<16x16xf32>
    %89 = arith.subf %85, %88 : vector<16x16xf32>
    %90 = math.exp %89 : vector<16x16xf32>
    %cst_30 = arith.constant dense<0.000000e+00> : vector<16xf32>
    %91 = vector.multi_reduction <add>, %90, %cst_30 [1] : vector<16x16xf32> to vector<16xf32>
    %92 = vector.shape_cast %91 : vector<16xf32> to vector<16x1xf32>
    %93 = tpu.reciprocal %92 {approx = true} : vector<16x1xf32> -> vector<16x1xf32>
    %94 = vector.broadcast %93 : vector<16x1xf32> to vector<16x16xf32>
    %95 = arith.mulf %90, %94 : vector<16x16xf32>
    %96 = arith.truncf %95 : vector<16x16xf32> to vector<16x16xbf16>
    %cst_31 = arith.constant dense<0.000000e+00> : vector<16x8xf32>
    %97 = tpu.matmul %96, %73, %cst_31 {dimension_numbers = #tpu.dot_dimension_numbers<[1], [0], [0], [1], [0, 0, 1, 1], [], []>} : vector<16x16xbf16>, vector<16x8xbf16>, vector<16x8xf32> -> vector<16x8xf32>
    %98 = vector.extract_strided_slice %8 {offsets = [0, 24], sizes = [16, 8], strides = [1, 1]} : vector<16x32xbf16> to vector<16x8xbf16>
    %99 = vector.extract_strided_slice %9 {offsets = [0, 24], sizes = [16, 8], strides = [1, 1]} : vector<16x32xbf16> to vector<16x8xbf16>
    %100 = vector.extract_strided_slice %10 {offsets = [0, 24], sizes = [16, 8], strides = [1, 1]} : vector<16x32xbf16> to vector<16x8xbf16>
    %cst_32 = arith.constant dense<0.000000e+00> : vector<16x16xf32>
    %101 = tpu.matmul %98, %99, %cst_32 {dimension_numbers = #tpu.dot_dimension_numbers<[1], [1], [0], [0], [0, 0, 1, 0], [], []>} : vector<16x8xbf16>, vector<16x8xbf16>, vector<16x16xf32> -> vector<16x16xf32>
    %102 = vector.extract_strided_slice %14 {offsets = [0, 3, 0], sizes = [16, 1, 16], strides = [1, 1, 1]} : vector<16x4x16xf32> to vector<16x1x16xf32>
    %103 = vector.shape_cast %102 : vector<16x1x16xf32> to vector<16x16xf32>
    %104 = arith.addf %101, %103 : vector<16x16xf32>
    %cst_33 = arith.constant 0.353553385 : f32
    %105 = vector.broadcast %cst_33 : f32 to vector<16x16xf32>
    %106 = arith.mulf %104, %105 : vector<16x16xf32>
    %cst_34 = arith.constant 0.000000e+00 : f32
    %107 = vector.broadcast %cst_34 : f32 to vector<1x16xf32>
    %108 = arith.cmpf ogt, %16, %107 : vector<1x16xf32>
    %cst_35 = arith.constant -1.000000e+30 : f32
    %109 = vector.shape_cast %108 : vector<1x16xi1> to vector<1x16xi1>
    %110 = vector.broadcast %109 : vector<1x16xi1> to vector<16x16xi1>
    %111 = vector.broadcast %cst_35 : f32 to vector<16x16xf32>
    %112 = arith.select %110, %111, %106 : vector<16x16xi1>, vector<16x16xf32>
    %cst_36 = arith.constant dense<0xFF800000> : vector<16xf32>
    %113 = vector.multi_reduction <maximumf>, %112, %cst_36 [1] : vector<16x16xf32> to vector<16xf32>
    %114 = vector.shape_cast %113 : vector<16xf32> to vector<16x1xf32>
    %115 = vector.broadcast %114 : vector<16x1xf32> to vector<16x16xf32>
    %116 = arith.subf %112, %115 : vector<16x16xf32>
    %117 = math.exp %116 : vector<16x16xf32>
    %cst_37 = arith.constant dense<0.000000e+00> : vector<16xf32>
    %118 = vector.multi_reduction <add>, %117, %cst_37 [1] : vector<16x16xf32> to vector<16xf32>
    %119 = vector.shape_cast %118 : vector<16xf32> to vector<16x1xf32>
    %120 = tpu.reciprocal %119 {approx = true} : vector<16x1xf32> -> vector<16x1xf32>
    %121 = vector.broadcast %120 : vector<16x1xf32> to vector<16x16xf32>
    %122 = arith.mulf %117, %121 : vector<16x16xf32>
    %123 = arith.truncf %122 : vector<16x16xf32> to vector<16x16xbf16>
    %cst_38 = arith.constant dense<0.000000e+00> : vector<16x8xf32>
    %124 = tpu.matmul %123, %100, %cst_38 {dimension_numbers = #tpu.dot_dimension_numbers<[1], [0], [0], [1], [0, 0, 1, 1], [], []>} : vector<16x16xbf16>, vector<16x8xbf16>, vector<16x8xf32> -> vector<16x8xf32>
    %125 = tpu.concatenate %43, %70, %97, %124 in 1 : vector<16x8xf32>, vector<16x8xf32>, vector<16x8xf32>, vector<16x8xf32> -> vector<16x32xf32>
    %126 = arith.truncf %125 : vector<16x32xf32> to vector<16x32xbf16>
    %c0_39 = arith.constant 0 : index
    %c0_40 = arith.constant 0 : index
    %127 = vector.load %arg5[%c0_39, %c0_40] : memref<32x32xbf16, #tpu.memory_space<vmem>>, vector<32x32xbf16>
    %cst_41 = arith.constant dense<0.000000e+00> : vector<16x32xf32>
    %128 = tpu.matmul %126, %127, %cst_41 {dimension_numbers = #tpu.dot_dimension_numbers<[1], [0], [0], [1], [0, 0, 1, 1], [], []>} : vector<16x32xbf16>, vector<32x32xbf16>, vector<16x32xf32> -> vector<16x32xf32>
    %129 = arith.addf %1, %128 : vector<16x32xf32>
    %cst_42 = arith.constant dense<0.000000e+00> : vector<16xf32>
    %130 = vector.multi_reduction <add>, %129, %cst_42 [1] : vector<16x32xf32> to vector<16xf32>
    %131 = vector.shape_cast %130 : vector<16xf32> to vector<16x1xf32>
    %cst_43 = arith.constant 3.200000e+01 : f32
    %132 = vector.broadcast %cst_43 : f32 to vector<16x1xf32>
    %133 = arith.divf %131, %132 : vector<16x1xf32>
    %134 = vector.broadcast %133 : vector<16x1xf32> to vector<16x32xf32>
    %135 = arith.subf %129, %134 : vector<16x32xf32>
    %136 = arith.mulf %135, %135 : vector<16x32xf32>
    %cst_44 = arith.constant dense<0.000000e+00> : vector<16xf32>
    %137 = vector.multi_reduction <add>, %136, %cst_44 [1] : vector<16x32xf32> to vector<16xf32>
    %138 = vector.shape_cast %137 : vector<16xf32> to vector<16x1xf32>
    %cst_45 = arith.constant 3.200000e+01 : f32
    %139 = vector.broadcast %cst_45 : f32 to vector<16x1xf32>
    %140 = arith.divf %138, %139 : vector<16x1xf32>
    %141 = vector.broadcast %133 : vector<16x1xf32> to vector<16x32xf32>
    %142 = arith.subf %129, %141 : vector<16x32xf32>
    %cst_46 = arith.constant 9.99999974E-6 : f32
    %143 = vector.broadcast %cst_46 : f32 to vector<16x1xf32>
    %144 = arith.addf %140, %143 : vector<16x1xf32>
    %145 = math.rsqrt %144 : vector<16x1xf32>
    %146 = vector.broadcast %145 : vector<16x1xf32> to vector<16x32xf32>
    %147 = arith.mulf %142, %146 : vector<16x32xf32>
    %c0_47 = arith.constant 0 : index
    %c0_48 = arith.constant 0 : index
    %148 = vector.load %arg6[%c0_47, %c0_48] : memref<1x32xf32, #tpu.memory_space<vmem>>, vector<1x32xf32>
    %149 = vector.broadcast %148 : vector<1x32xf32> to vector<16x32xf32>
    %150 = arith.mulf %147, %149 : vector<16x32xf32>
    %c0_49 = arith.constant 0 : index
    %c0_50 = arith.constant 0 : index
    %151 = vector.load %arg7[%c0_49, %c0_50] : memref<1x32xf32, #tpu.memory_space<vmem>>, vector<1x32xf32>
    %152 = vector.broadcast %151 : vector<1x32xf32> to vector<16x32xf32>
    %153 = arith.addf %150, %152 : vector<16x32xf32>
    %154 = arith.truncf %153 : vector<16x32xf32> to vector<16x32xbf16>
    %c0_51 = arith.constant 0 : index
    %c0_52 = arith.constant 0 : index
    %155 = vector.load %arg8[%c0_51, %c0_52] : memref<32x128xbf16, #tpu.memory_space<vmem>>, vector<32x128xbf16>
    %cst_53 = arith.constant dense<0.000000e+00> : vector<16x128xf32>
    %156 = tpu.matmul %154, %155, %cst_53 {dimension_numbers = #tpu.dot_dimension_numbers<[1], [0], [0], [1], [0, 0, 1, 1], [], []>} : vector<16x32xbf16>, vector<32x128xbf16>, vector<16x128xf32> -> vector<16x128xf32>
    %c0_54 = arith.constant 0 : index
    %c0_55 = arith.constant 0 : index
    %157 = vector.load %arg9[%c0_54, %c0_55] : memref<1x128xf32, #tpu.memory_space<vmem>>, vector<1x128xf32>
    %158 = vector.broadcast %157 : vector<1x128xf32> to vector<16x128xf32>
    %159 = arith.addf %156, %158 : vector<16x128xf32>
    %cst_56 = arith.constant 0.000000e+00 : f32
    %160 = vector.broadcast %cst_56 : f32 to vector<16x128xf32>
    %161 = arith.maximumf %159, %160 : vector<16x128xf32>
    %162 = arith.truncf %161 : vector<16x128xf32> to vector<16x128xbf16>
    %c0_57 = arith.constant 0 : index
    %c0_58 = arith.constant 0 : index
    %163 = vector.load %arg10[%c0_57, %c0_58] : memref<128x32xbf16, #tpu.memory_space<vmem>>, vector<128x32xbf16>
    %cst_59 = arith.constant dense<0.000000e+00> : vector<16x32xf32>
    %164 = tpu.matmul %162, %163, %cst_59 {dimension_numbers = #tpu.dot_dimension_numbers<[1], [0], [0], [1], [0, 0, 1, 1], [], []>} : vector<16x128xbf16>, vector<128x32xbf16>, vector<16x32xf32> -> vector<16x32xf32>
    %c0_60 = arith.constant 0 : index
    %c0_61 = arith.constant 0 : index
    %165 = vector.load %arg11[%c0_60, %c0_61] : memref<1x32xf32, #tpu.memory_space<vmem>>, vector<1x32xf32>
    %166 = vector.broadcast %165 : vector<1x32xf32> to vector<16x32xf32>
    %167 = arith.addf %164, %166 : vector<16x32xf32>
    %168 = arith.addf %153, %167 : vector<16x32xf32>
    %cst_62 = arith.constant dense<0.000000e+00> : vector<16xf32>
    %169 = vector.multi_reduction <add>, %168, %cst_62 [1] : vector<16x32xf32> to vector<16xf32>
    %170 = vector.shape_cast %169 : vector<16xf32> to vector<16x1xf32>
    %cst_63 = arith.constant 3.200000e+01 : f32
    %171 = vector.broadcast %cst_63 : f32 to vector<16x1xf32>
    %172 = arith.divf %170, %171 : vector<16x1xf32>
    %173 = vector.broadcast %172 : vector<16x1xf32> to vector<16x32xf32>
    %174 = arith.subf %168, %173 : vector<16x32xf32>
    %175 = arith.mulf %174, %174 : vector<16x32xf32>
    %cst_64 = arith.constant dense<0.000000e+00> : vector<16xf32>
    %176 = vector.multi_reduction <add>, %175, %cst_64 [1] : vector<16x32xf32> to vector<16xf32>
    %177 = vector.shape_cast %176 : vector<16xf32> to vector<16x1xf32>
    %cst_65 = arith.constant 3.200000e+01 : f32
    %178 = vector.broadcast %cst_65 : f32 to vector<16x1xf32>
    %179 = arith.divf %177, %178 : vector<16x1xf32>
    %180 = vector.broadcast %172 : vector<16x1xf32> to vector<16x32xf32>
    %181 = arith.subf %168, %180 : vector<16x32xf32>
    %cst_66 = arith.constant 9.99999974E-6 : f32
    %182 = vector.broadcast %cst_66 : f32 to vector<16x1xf32>
    %183 = arith.addf %179, %182 : vector<16x1xf32>
    %184 = math.rsqrt %183 : vector<16x1xf32>
    %185 = vector.broadcast %184 : vector<16x1xf32> to vector<16x32xf32>
    %186 = arith.mulf %181, %185 : vector<16x32xf32>
    %c0_67 = arith.constant 0 : index
    %c0_68 = arith.constant 0 : index
    %187 = vector.load %arg12[%c0_67, %c0_68] : memref<1x32xf32, #tpu.memory_space<vmem>>, vector<1x32xf32>
    %188 = vector.broadcast %187 : vector<1x32xf32> to vector<16x32xf32>
    %189 = arith.mulf %186, %188 : vector<16x32xf32>
    %c0_69 = arith.constant 0 : index
    %c0_70 = arith.constant 0 : index
    %190 = vector.load %arg13[%c0_69, %c0_70] : memref<1x32xf32, #tpu.memory_space<vmem>>, vector<1x32xf32>
    %191 = vector.broadcast %190 : vector<1x32xf32> to vector<16x32xf32>
    %192 = arith.addf %189, %191 : vector<16x32xf32>
    %c0_71 = arith.constant 0 : index
    %c0_72 = arith.constant 0 : index
    %c0_73 = arith.constant 0 : index
    %193 = vector.load %arg14[%c0_71, %c0_72, %c0_73] : memref<1x16x32xf32, #tpu.memory_space<vmem>>, vector<1x16x32xf32>
    %194 = vector.shape_cast %193 : vector<1x16x32xf32> to vector<16x32xf32>
    %195 = vector.shape_cast %192 : vector<16x32xf32> to vector<1x16x32xf32>
    tpu.vector_store %arg14[%c0_71, %c0_72, %c0_73], %195 {strides = array<i32>} : memref<1x16x32xf32, #tpu.memory_space<vmem>>, vector<1x16x32xf32>,
    return
  }
  func.func @transform_0(%arg0: i32) -> (i32, i32, i32) {
    %c0_i32 = arith.constant 0 : i32
    %c0_i32_0 = arith.constant 0 : i32
    %c0_i32_1 = arith.constant 0 : i32
    return %arg0, %c0_i32, %c0_i32_0 : i32, i32, i32
  }
  func.func @transform_1(%arg0: i32) -> (i32, i32, i32) {
    %c0_i32 = arith.constant 0 : i32
    %c0_i32_0 = arith.constant 0 : i32
    %c0_i32_1 = arith.constant 0 : i32
    return %arg0, %c0_i32, %c0_i32_0 : i32, i32, i32
  }
  func.func @transform_2(%arg0: i32) -> (i32, i32, i32) {
    %c0_i32 = arith.constant 0 : i32
    %c0_i32_0 = arith.constant 0 : i32
    %c0_i32_1 = arith.constant 0 : i32
    %c0_i32_2 = arith.constant 0 : i32
    return %c0_i32, %c0_i32_0, %c0_i32_1 : i32, i32, i32
  }
  func.func @transform_3(%arg0: i32) -> (i32, i32) {
    %c0_i32 = arith.constant 0 : i32
    %c0_i32_0 = arith.constant 0 : i32
    %c0_i32_1 = arith.constant 0 : i32
    return %c0_i32, %c0_i32_0 : i32, i32
  }
  func.func @transform_4(%arg0: i32) -> (i32, i32) {
    %c0_i32 = arith.constant 0 : i32
    %c0_i32_0 = arith.constant 0 : i32
    %c0_i32_1 = arith.constant 0 : i32
    return %c0_i32, %c0_i32_0 : i32, i32
  }
  func.func @transform_5(%arg0: i32) -> (i32, i32) {
    %c0_i32 = arith.constant 0 : i32
    %c0_i32_0 = arith.constant 0 : i32
    %c0_i32_1 = arith.constant 0 : i32
    return %c0_i32, %c0_i32_0 : i32, i32
  }
  func.func @transform_6(%arg0: i32) -> (i32, i32) {
    %c0_i32 = arith.constant 0 : i32
    %c0_i32_0 = arith.constant 0 : i32
    %c0_i32_1 = arith.constant 0 : i32
    return %c0_i32, %c0_i32_0 : i32, i32
  }
  func.func @transform_7(%arg0: i32) -> (i32, i32) {
    %c0_i32 = arith.constant 0 : i32
    %c0_i32_0 = arith.constant 0 : i32
    %c0_i32_1 = arith.constant 0 : i32
    return %c0_i32, %c0_i32_0 : i32, i32
  }
  func.func @transform_8(%arg0: i32) -> (i32, i32) {
    %c0_i32 = arith.constant 0 : i32
    %c0_i32_0 = arith.constant 0 : i32
    %c0_i32_1 = arith.constant 0 : i32
    return %c0_i32, %c0_i32_0 : i32, i32
  }
  func.func @transform_9(%arg0: i32) -> (i32, i32) {
    %c0_i32 = arith.constant 0 : i32
    %c0_i32_0 = arith.constant 0 : i32
    %c0_i32_1 = arith.constant 0 : i32
    return %c0_i32, %c0_i32_0 : i32, i32
  }
  func.func @transform_10(%arg0: i32) -> (i32, i32) {
    %c0_i32 = arith.constant 0 : i32
    %c0_i32_0 = arith.constant 0 : i32
    %c0_i32_1 = arith.constant 0 : i32
    return %c0_i32, %c0_i32_0 : i32, i32
  }
  func.func @transform_11(%arg0: i32) -> (i32, i32) {
    %c0_i32 = arith.constant 0 : i32
    %c0_i32_0 = arith.constant 0 : i32
    %c0_i32_1 = arith.constant 0 : i32
    return %c0_i32, %c0_i32_0 : i32, i32
  }
  func.func @transform_12(%arg0: i32) -> (i32, i32) {
    %c0_i32 = arith.constant 0 : i32
    %c0_i32_0 = arith.constant 0 : i32
    %c0_i32_1 = arith.constant 0 : i32
    return %c0_i32, %c0_i32_0 : i32, i32
  }
  func.func @transform_13(%arg0: i32) -> (i32, i32, i32) {
    %c0_i32 = arith.constant 0 : i32
    %c0_i32_0 = arith.constant 0 : i32
    %c0_i32_1 = arith.constant 0 : i32
    return %arg0, %c0_i32, %c0_i32_0 : i32, i32, i32
  }
}

</mosaic_0001>

<bundles_post_ra>
// kernel: tpu_custom_call.1
= control target key start
LH: loop header
LB: loop body
LE: loop exit
PB: predicated region body
PF: predicated region fallthrough
CT: control target
= control target key end

     0   :  { %s3837_s0 = inlined_call_operand.vmem [shape: f32[2,16,32], index: 0, kind: input, shape index: {}]   ;;  %s3838_s1 = inlined_call_operand.vmem [shape: f32[2,1,16], index: 1, kind: input, shape index: {}]   ;;  %s3839_s2 = inlined_call_operand.vmem [shape: bf16[16,16,8], index: 2, kind: input, shape index: {}]   ;;  %s3840_s3 = inlined_call_operand.vmem [shape: bf16[32,96], index: 3, kind: input, shape index: {}]   ;;  %s3841_s4 = inlined_call_operand.vmem [shape: bf16[32,32], index: 4, kind: input, shape index: {}]   ;;  %s3842_s5 = inlined_call_operand.vmem [shape: f32[1,32], index: 5, kind: input, shape index: {}]   ;;  %s3843_s6 = inlined_call_operand.vmem [shape: f32[1,32], index: 6, kind: input, shape index: {}]   ;;  %s3844_s7 = inlined_call_operand.vmem [shape: bf16[32,128], index: 7, kind: input, shape index: {}]   ;;  %s3845_s8 = inlined_call_operand.vmem [shape: f32[1,128], index: 8, kind: input, shape index: {}]   ;;  %s3846_s9 = inlined_call_operand.vmem [shape: bf16[128,32], index: 9, kind: input, shape index: {}]   ;;  %s3847_s10 = inlined_call_operand.vmem [shape: f32[1,32], index: 10, kind: input, shape index: {}]   ;;  %s3848_s11 = inlined_call_operand.vmem [shape: f32[1,32], index: 11, kind: input, shape index: {}]   ;;  %s3849_s12 = inlined_call_operand.vmem [shape: f32[1,32], index: 12, kind: input, shape index: {}]   ;;  %s3850_s13 = inlined_call_operand.hbm [shape: f32[2,16,32], index: 13, kind: output, shape index: {}]  }
   0x1   :  { %3852 = sst [smem:[#allocation5_spill]] %s3837_s0 }
   0x2   :  { %3853 = sst [smem:[#allocation6_spill]] %s3838_s1 }
   0x3   :  { %3854 = sst [smem:[#allocation7_spill]] %s3839_s2 }
   0x4   :  { %3855 = sst [smem:[#allocation8_spill]] %s3840_s3 }
   0x5   :  { %18 = vsyncpa [#allocation3], 0 }
   0x6   :  { %20 = vsyncpa [#allocation3 + $0x1], 0  ;;  %s3278_s25 = smov 0   ;;  %s3280_s26 = smov 0  }
   0x7   :  { %s3282_s27 = smov 0   ;;  %s3284_s28 = smov 0  }
   0x8 LB: > { %s3299_s29 = sadd.s32 4294967295, %s3185_s28   ;;  %s2646_s30 = sadd.s32 4294967294, %s3185_s28   ;;  %s3185_s28 = sphi %s3284_s28, %s3866_s28   ;;  %s3181_s27 = sphi %s3282_s27, %s3865_s27   ;;  %s3177_s26 = sphi %s3280_s26, %s3864_s26   ;;  %s3173_s25 = sphi %s3278_s25, %s3863_s25  }
   0x9   : > { %s3303_s14 = sadd.s32 1, %s3185_s28   ;;  %s316_s15 = sadd.s32 1, %s3181_s27 }
   0xa   : > { %s313_s16 = ssub.s32 %s3185_s28, %s3303_s14  ;;  %p326_p0 = scmp.ne.s32.totalorder %s3181_s27, %s3177_s26 }
   0xb   : > { %p314_p1 = scmp.eq.s32.totalorder %s313_s16, 0  ;;  %p327_p2 = scmp.eq.s32.totalorder %s3299_s29, 1 }
   0xc   : > { %p332_p3 = scmp.ne.s32.totalorder %s3177_s26, %s3173_s25  ;;  %p333_p4 = scmp.eq.s32.totalorder %s2646_s30, 1 }
   0xd   : > { %s3314_s17 = scalar_select %p314_p1, %s3181_s27, %s316_s15  }
   0xe   : > { %p3316_p5 = por %p327_p2, %p326_p0  ;;  %p3320_p6 = por %p333_p4, %p332_p3 }
   0xf   : > { %p2649_p7 = scmp.ge.s32.totalorder %s3185_s28, 1  ;;  %p398_p8 = scmp.lt.s32.totalorder %s3185_s28, 3 }
  0x11   : > { %p399_p9 = pnand %p2649_p7, %p398_p8 }
  0x12   : > { %s3858_s3 = sld [smem:[#allocation8_spill]] (!%p399_p9)  ;;  %v576_v1 = vlaneseq (!%p399_p9)  ;;  %v3187_v2 = vmov (!%p399_p9), 0.0   ;;  %vm3188_vm0 = vmmov (!%p399_p9), 0   ;;  %p445_p10 = scmp.lt.s32.totalorder (!%p399_p9), %s3299_s29, 1  ;;  %vm473_vm1 = vcmask (!%p399_p9), 261120  }
  0x13   : > { %402 = sbr.rel (%p399_p9) target bundleno = 2674 (0xa72), region = 72  ;;  %2789 = vmatprep.subr.bf16.mxu0 (!%p399_p9), %v3187_v2  ;;  %2809 = vmatprep.subr.bf16.mxu1 (!%p399_p9), %v3187_v2  ;;  %s3859_s1 = sld [smem:[#allocation6_spill]] (!%p399_p9)  ;;  %v3189_v10 = vmov (!%p399_p9), 0   ;;  %vm728_vm3 = vcmask (!%p399_p9), 64512   ;;  %v3197_v22 = vmov (!%p399_p9), 1983009808  }
  0x14   : > { %2793 = vmatprep.mubr.msk.bf16.mxu0 (!%p399_p9), %vm3188_vm0, %v3187_v2  ;;  %v3338_v4 = vshrl.u32 (!%p399_p9), %v576_v1, 7  ;;  %2811 = vmatprep.mubr.msk.bf16.mxu1 (!%p399_p9), %vm3188_vm0, %v3187_v2  ;;  %s3860_s0 = sld [smem:[#allocation5_spill]] (!%p399_p9)  ;;  %s3861_s2 = sld [smem:[#allocation7_spill]] (!%p399_p9)  ;;  %v574_v23 = vunpack.c.l.s4 (!%p399_p9), %v3197_v22  ;;  %v3198_v25 = vmov (!%p399_p9), 1934713408   ;;  %vm1561_vm4 = vcmask (!%p399_p9), 1041409  }
  0x15   : > { %s3191_s21 = smov (!%p399_p9), 120   ;;  %s3192_s22 = smov (!%p399_p9), 112   ;;  %v606_v26 = vunpack.c.l.s4 (!%p399_p9), %v3198_v25  ;;  %vm1564_vm5 = vcmask (!%p399_p9), 1042434   ;;  %vm1567_vm6 = vcmask (!%p399_p9), 1043459   ;;  %vm1570_vm7 = vcmask (!%p399_p9), 1044484  }
  0x16   : > { %v1650_v5 = vsub.s32 (!%p399_p9), 0, %v3338_v4  ;;  %s3195_s15 = smov (!%p399_p9), 80   ;;  %s3196_s16 = smov (!%p399_p9), 72   ;;  %v575_v24 = vunpack.c.0.s8 (!%p399_p9), %v574_v23  ;;  %vm1573_vm8 = vcmask (!%p399_p9), 1045509   ;;  %vm1576_vm9 = vcmask (!%p399_p9), 1046534  }
  0x17   : > { %v607_v30 = vunpack.c.0.s8 (!%p399_p9), %v606_v26  ;;  %vm1579_vm10 = vcmask (!%p399_p9), 1047559   ;;  %vm1655_vm12 = vcmask (!%p399_p9), 130048   ;;  %vm2219_vm13 = vcmask (!%p399_p9), 195584  }
  0x18   : > { %v3051_v0 = vld [vmem:[%s3858_s3] sm:$0xff] (!%p399_p9)   ;;  %v3052_v3 = vld [vmem:[%s3858_s3 + $0x8] sm:$0xff] (!%p399_p9)   ;;  %v3386_v29 = vsub.s32 (!%p399_p9), %v575_v24, %v3338_v4 }
  0x19   : > { %2790 = vmatpush3.bf16.msra.mxu0 (!%p399_p9), %v3051_v0  ;;  %v3389_v34 = vsub.s32 (!%p399_p9), %v607_v30, %v3338_v4 }
  0x1a   : > { %2791 = vmatprep.subr.bf16.mxu0 %v3187_v2  ;;  %s446_s24 = scalar_select %p445_p10, %s3299_s29, 1  ;;  %v3054_v13 = vld [vmem:[%s3861_s2 + $0x10] sm:$0xff]   ;;  %v3053_v14 = vld [vmem:[%s3861_s2] sm:$0xff]   ;;  %v3055_v40 = vld [vmem:[%s3861_s2 + $0x8] sm:$0xff]  }
  0x1b   : > { %v835_v15 = vsel %vm728_vm3, %v3054_v13, 0  ;;  %v733_v16 = vsel %vm728_vm3, %v3053_v14, 0  ;;  %v3056_v45 = vld [vmem:[%s3861_s2 + $0x20] sm:$0xff]   ;;  %v784_v47 = vsel %vm728_vm3, %v3055_v40, 0  ;;  %v3057_v54 = vld [vmem:[%s3861_s2 + $0x18] sm:$0xff]   ;;  %v3058_v56 = vld [vmem:[%s3861_s2 + $0x30] sm:$0xff]  }
  0x1c   : > { %s2721_s30 = sshll.u32 %s446_s24, 4  ;;  %s452_s20 = scalar_lea.vmem %s3859_s1, %s446_s24  ;;  %2810 = vmatpush3.bf16.xpose.msra.mxu1 %v835_v15  ;;  %v937_v52 = vsel %vm728_vm3, %v3056_v45, 0  ;;  %v886_v60 = vsel %vm728_vm3, %v3057_v54, 0  ;;  %v1039_v1 = vsel %vm728_vm3, %v3058_v56, 0  ;;  %v3059_v4 = vld [vmem:[%s3861_s2 + $0x28] sm:$0xff]   ;;  %v3065_v40 = vld [vmem:[%s3861_s2 + $0x58] sm:$0xff]  }
  0x1d   : > { %2792 = vmatpush3.bf16.msra.mxu0 %v3052_v3  ;;  %s3350_s23 = scalar_lea.vmem %s3860_s0, %s2721_s30  ;;  %v1540_v6 = vld [vmem:[%s452_s20] sm:$0x1]  ;;  %2821 = vmatprep.subr.bf16.mxu1 %v3187_v2  ;;  %s3190_s20 = smov 104  }
  0x1e   : > { %2797 = vmatprep.subr.bf16.mxu0 %v3187_v2  ;;  %v454_v7 = vld [vmem:[%s3350_s23] sm:$0xff]  ;;  %v455_v8 = vld [vmem:[%s3350_s23 + $0x8] sm:$0xff]  ;;  %vm1646_vm2 = vcmp.gt.f32.partialorder %v1540_v6, 0.0  ;;  %s3193_s24 = smov 88   ;;  %s3194_s30 = smov 96  }
  0x1f   : > { %v456_v9 = vpack.c.bf16 %v455_v8, %v454_v7  ;;  %v1647_v11 = vsel %vm1646_vm2, 1, %v3189_v10  ;;  %v3060_v8 = vld [vmem:[%s3861_s2 + $0x40] sm:$0xff]   ;;  %v988_v10 = vsel %vm728_vm3, %v3059_v4, 0  ;;  %s3206_s1 = smov [#allocation2]  }
  0x20   : > { %v3355_v12 = vrot.slane %v1647_v11, %v1650_v5  ;;  %v1141_v14 = vsel %vm728_vm3, %v3060_v8, 0 }
  0x21   : > { %2794 = vmatmul.mubr.msk.bf16.vlgmr.msra.gmra.mrb[0].mxu0 %vm473_vm1, %v456_v9 }
  0x22   : > { %2799 = vmatprep.mubr.msk.bf16.mxu0 %vm3188_vm0, %v3187_v2  ;;  %vm1652_vm11 = vcmp.eq.s32.totalorder %v3355_v12, 1 }
  0x26   : > { %2798 = vmatpush3.bf16.xpose.msra.mxu0 %v733_v16  ;;  %v3061_v16 = vld [vmem:[%s3861_s2 + $0x38] sm:$0xff]  }
  0x27   : > { %2803 = vmatprep.subr.bf16.mxu0 %v3187_v2  ;;  %v1090_v22 = vsel %vm728_vm3, %v3061_v16, 0 }
  0xf4   : > { %v511_v17 = vpop.f32.mrb[0].mxu0 }
  0xf5   : > { %565 = vrot.lane.b32.xlu1 %v511_v17, %s3190_s20  ;;  %553 = vrot.lane.b32.xlu0 %v511_v17, %s3191_s21  ;;  %v2795_v18 = vpop.f32.mrb[1].mxu0 }
  0xf6   : > { %v3370_v19 = vpop.f32.mrb[2].mxu0  ;;  %v3062_v18 = vld [vmem:[%s3861_s2 + $0x50] sm:$0xff]  }
  0xf7   : > { %v3373_v20 = vpack.c.bf16 %v3370_v19, %v511_v17  ;;  %v2796_v21 = vpop.f32.mrb[3].mxu0 }
  0xf9   : > { %559 = vrot.lane.b32.xlu0 %v511_v17, %s3192_s22  ;;  %555 = vrot.lane.b32.xlu1 %v3370_v19, %s3191_s21 }
  0xfd   : > { %561 = vrot.lane.b32.xlu0 %v3370_v19, %s3192_s22  ;;  %567 = vrot.lane.b32.xlu1 %v3370_v19, %s3190_s20 }
 0x101   : > { %1728 = vrot.lane.b32.xlu1 %v3373_v20, %s3193_s24  ;;  %1542 = vrot.lane.b32.xlu0 %v3373_v20, %s3194_s30  ;;  %s3202_s24 = smov 40   ;;  %s3851_s30 = smov 8  }
 0x105   : > { %1883 = vrot.lane.b32.xlu1 %v3373_v20, %s3195_s15  ;;  %1726 = vrot.lane.b32.xlu0 %v3373_v20, %s3191_s21  ;;  %s3200_s21 = smov 64  }
 0x109   : > { %2038 = vrot.lane.b32.xlu1 %v3373_v20, %s3196_s16  ;;  %1881 = vrot.lane.b32.xlu0 %v3373_v20, %s3192_s22  ;;  %s3201_s22 = smov 48   ;;  %s2722_s16 = sshll.u32 %s3299_s29, 8 }
 0x10a   : > { %s3789_s3 = scalar_lea.hbm %s3850_s13, %s2722_s16 }
 0x10d   : > { %2036 = vrot.lane.b32.xlu0 %v3373_v20, %s3190_s20  ;;  %s3199_s20 = smov 56  }
 0x167   : > { %v566_v27 = vpop.permute.xlu1 %565  ;;  %v554_v28 = vpop.permute.xlu0 %553 }
 0x168   : > { %v587_v31 = vcombine.low %v554_v28, %v566_v27  ;;  %v588_v41 = vcombine.high %v554_v28, %v566_v27  ;;  %v1243_v27 = vsel %vm728_vm3, %v3062_v18, 0 }
 0x16a   : > { %v595_v35 = vrot.slane %v587_v31, %v3386_v29  ;;  %v602_v48 = vrot.slane %v588_v41, %v3386_v29 }
 0x16b   : > { %v560_v32 = vpop.permute.xlu0 %559  ;;  %v3404_v49 = vpop.permute.xlu1 %555 }
 0x16c   : > { %v571_v33 = vcombine.low %v511_v17, %v560_v32  ;;  %v572_v37 = vcombine.high %v511_v17, %v560_v32 }
 0x16e   : > { %v579_v36 = vrot.slane %v571_v33, %v3386_v29  ;;  %v586_v43 = vrot.slane %v572_v37, %v3386_v29  ;;  %v3064_v33 = vld [vmem:[%s3861_s2 + $0x60] sm:$0xff]  }
 0x16f   : > { %v562_v58 = vpop.permute.xlu0 %561  ;;  %v568_v59 = vpop.permute.xlu1 %567 }
 0x170   : > { %v603_v38 = vcombine.low %v579_v36, %v595_v35  ;;  %v604_v39 = vcombine.high %v579_v36, %v595_v35  ;;  %v619_v50 = vcombine.low %v586_v43, %v602_v48  ;;  %v620_v61 = vcombine.high %v586_v43, %v602_v48 }
 0x171   : > { %v639_v63 = vcombine.low %v3370_v19, %v562_v58  ;;  %v655_v0 = vcombine.low %v3404_v49, %v568_v59  ;;  %v640_v23 = vcombine.high %v3370_v19, %v562_v58  ;;  %v656_v24 = vcombine.high %v3404_v49, %v568_v59  ;;  %v3063_v19 = vld [vmem:[%s3861_s2 + $0x48] sm:$0xff]  }
 0x172   : > { %v611_v42 = vrot.slane %v603_v38, %v3389_v34  ;;  %v618_v44 = vrot.slane %v604_v39, %v3389_v34  ;;  %v627_v55 = vrot.slane %v619_v50, %v3389_v34  ;;  %v634_v5 = vrot.slane %v620_v61, %v3389_v34  ;;  %v3067_v49 = vld [vmem:[%s3861_s2 + $0x68] sm:$0xff]  }
 0x173   : > { %v647_v6 = vrot.slane %v639_v63, %v3386_v29  ;;  %v663_v7 = vrot.slane %v655_v0, %v3386_v29  ;;  %v654_v30 = vrot.slane %v640_v23, %v3386_v29  ;;  %v670_v31 = vrot.slane %v656_v24, %v3386_v29  ;;  %v1729_v59 = vpop.permute.xlu1 %1728 }
 0x174   : > { %v707_v46 = vpack.c.bf16 %v611_v42, %v611_v42  ;;  %v709_v51 = vpack.c.bf16 %v618_v44, %v618_v44  ;;  %v635_v53 = vcombine.high %v611_v42, %v3187_v2  ;;  %v711_v62 = vpack.c.bf16 %v627_v55, %v627_v55  ;;  %v3066_v42 = vld [vmem:[%s3861_s2 + $0x70] sm:$0xff]  }
 0x175   : > { %v636_v3 = vcombine.high %v618_v44, %v3187_v2  ;;  %v713_v11 = vpack.c.bf16 %v634_v5, %v634_v5  ;;  %v671_v13 = vcombine.low %v647_v6, %v663_v7  ;;  %v637_v15 = vcombine.high %v627_v55, %v3187_v2 }
 0x176   : > { %2800 = vmatmul.mubr.msk.bf16.vlgmr.msra.gmra.mrb[4].mxu0 %vm728_vm3, %v707_v46  ;;  %2812 = vmatmul.mubr.msk.bf16.vlgmr.msra.gmra.mrb[0].mxu1 %vm728_vm3, %v709_v51  ;;  %v708_v57 = vpack.c.bf16 %v635_v53, %v635_v53  ;;  %v672_v25 = vcombine.high %v647_v6, %v663_v7  ;;  %v638_v28 = vcombine.high %v634_v5, %v3187_v2  ;;  %v1192_v36 = vsel %vm728_vm3, %v3063_v19, 0  ;;  %v1543_v53 = vpop.permute.xlu0 %1542 }
 0x177   : > { %2804 = vmatpush3.bf16.xpose.msra.mxu0 %v784_v47  ;;  %2805 = vmatprep.mubr.msk.bf16.mxu0 %vm3188_vm0, %v3187_v2  ;;  %v710_v9 = vpack.c.bf16 %v636_v3, %v636_v3  ;;  %v679_v17 = vrot.slane %v671_v13, %v3389_v34  ;;  %v712_v21 = vpack.c.bf16 %v637_v15, %v637_v15  ;;  %v1345_v39 = vsel %vm728_vm3, %v3064_v33, 0  ;;  %v1884_v63 = vpop.permute.xlu1 %1883 }
 0x178   : > { %2815 = vmatprep.subr.bf16.mxu0 %v3187_v2  ;;  %2822 = vmatpush3.bf16.xpose.msra.mxu1 %v937_v52  ;;  %v686_v32 = vrot.slane %v672_v25, %v3389_v34  ;;  %v714_v35 = vpack.c.bf16 %v638_v28, %v638_v28  ;;  %v687_v37 = vcombine.low %v654_v30, %v670_v31  ;;  %v1294_v44 = vsel %vm728_vm3, %v3065_v40, 0 }
 0x179   : > { %2823 = vmatprep.mubr.msk.bf16.mxu1 %vm3188_vm0, %v3187_v2  ;;  %2833 = vmatprep.subr.bf16.mxu1 %v3187_v2  ;;  %v715_v26 = vpack.c.bf16 %v679_v17, %v679_v17  ;;  %v703_v29 = vcombine.high %v679_v17, %v3187_v2  ;;  %v688_v45 = vcombine.high %v654_v30, %v670_v31  ;;  %v1447_v47 = vsel %vm728_vm3, %v3066_v42, 0 }
 0x17a   : > { %v717_v38 = vpack.c.bf16 %v686_v32, %v686_v32  ;;  %v695_v41 = vrot.slane %v687_v37, %v3389_v34  ;;  %v704_v48 = vcombine.high %v686_v32, %v3187_v2  ;;  %v1396_v52 = vsel %vm728_vm3, %v3067_v49, 0  ;;  %v1727_v0 = vpop.permute.xlu0 %1726 }
 0x17b   : > { %v716_v43 = vpack.c.bf16 %v703_v29, %v703_v29  ;;  %v702_v50 = vrot.slane %v688_v45, %v3389_v34  ;;  %v3068_v34 = vld [vmem:[%s3861_s2 + $0x78] sm:$0xff]   ;;  %v1601_v56 = vsel %vm728_vm3, %v1543_v53, 0  ;;  %v1764_v61 = vsel %vm728_vm3, %v1729_v59, 0  ;;  %v2039_v3 = vpop.permute.xlu1 %2038  ;;  %s3127_s2 = sshll.u32 %s3206_s1, 4  ;;  %s3128_s2 = int_to_ptr.vmem [resolvable:$false] %s3127_s2 }
 0x17c   : > { %v719_v46 = vpack.c.bf16 %v695_v41, %v695_v41  ;;  %v718_v51 = vpack.c.bf16 %v704_v48, %v704_v48  ;;  %v705_v55 = vcombine.high %v695_v41, %v3187_v2  ;;  %v1498_v58 = vsel %vm728_vm3, %v3068_v34, 0 }
 0x17d   : > { %v721_v54 = vpack.c.bf16 %v702_v50, %v702_v50  ;;  %v2074_v5 = vsel %vm728_vm3, %v2039_v3, 0 }
 0x17e   : > { %2806 = vmatmul.mubr.msk.bf16.vlgmr.msra.gmra.mrb[8].mxu0 %vm728_vm3, %v708_v57  ;;  %v720_v57 = vpack.c.bf16 %v705_v55, %v705_v55  ;;  %v1882_v4 = vpop.permute.xlu0 %1881 }
 0x17f   : > { %2816 = vmatpush3.bf16.xpose.msra.mxu0 %v886_v60  ;;  %2817 = vmatprep.mubr.msk.bf16.mxu0 %vm3188_vm0, %v3187_v2  ;;  %v706_v60 = vcombine.high %v702_v50, %v3187_v2 }
 0x180   : > { %2827 = vmatprep.subr.bf16.mxu0 %v3187_v2  ;;  %2824 = vmatmul.mubr.msk.bf16.vlgmr.msra.gmra.mrb[4].mxu1 %vm728_vm3, %v711_v62 }
 0x181   : > { %2834 = vmatpush3.bf16.xpose.msra.mxu1 %v1039_v1  ;;  %2835 = vmatprep.mubr.msk.bf16.mxu1 %vm3188_vm0, %v3187_v2  ;;  %v722_v62 = vpack.c.bf16 %v706_v60, %v706_v60  ;;  %v1919_v1 = vsel %vm728_vm3, %v1884_v63, 0 }
 0x182   : > { %2845 = vmatprep.subr.bf16.mxu1 %v3187_v2  ;;  %v2037_v6 = vpop.permute.xlu0 %2036 }
 0x186   : > { %2818 = vmatmul.mubr.msk.bf16.vlgmr.msra.gmra.mrb[12].mxu0 %vm728_vm3, %v710_v9 }
 0x187   : > { %2828 = vmatpush3.bf16.xpose.msra.mxu0 %v988_v10  ;;  %2829 = vmatprep.mubr.msk.bf16.mxu0 %vm3188_vm0, %v3187_v2 }
 0x188   : > { %2839 = vmatprep.subr.bf16.mxu0 %v3187_v2  ;;  %2836 = vmatmul.mubr.msk.bf16.vlgmr.msra.gmra.mrb[8].mxu1 %vm728_vm3, %v713_v11 }
 0x189   : > { %2846 = vmatpush3.bf16.xpose.msra.mxu1 %v1141_v14  ;;  %2847 = vmatprep.mubr.msk.bf16.mxu1 %vm3188_vm0, %v3187_v2 }
 0x18a   : > { %2857 = vmatprep.subr.bf16.mxu1 %v3187_v2 }
 0x18e   : > { %2830 = vmatmul.mubr.msk.bf16.vlgmr.msra.gmra.mrb[16].mxu0 %vm728_vm3, %v712_v21 }
 0x18f   : > { %2840 = vmatpush3.bf16.xpose.msra.mxu0 %v1090_v22  ;;  %2841 = vmatprep.mubr.msk.bf16.mxu0 %vm3188_vm0, %v3187_v2 }
 0x190   : > { %2851 = vmatprep.subr.bf16.mxu0 %v3187_v2  ;;  %2848 = vmatmul.mubr.msk.bf16.vlgmr.msra.gmra.mrb[12].mxu1 %vm728_vm3, %v715_v26 }
 0x191   : > { %2858 = vmatpush3.bf16.xpose.msra.mxu1 %v1243_v27  ;;  %2859 = vmatprep.mubr.msk.bf16.mxu1 %vm3188_vm0, %v3187_v2 }
 0x192   : > { %2869 = vmatprep.subr.bf16.mxu1 %v3187_v2 }
 0x196   : > { %2842 = vmatmul.mubr.msk.bf16.vlgmr.msra.gmra.mrb[20].mxu0 %vm728_vm3, %v714_v35 }
 0x197   : > { %2852 = vmatpush3.bf16.xpose.msra.mxu0 %v1192_v36  ;;  %2853 = vmatprep.mubr.msk.bf16.mxu0 %vm3188_vm0, %v3187_v2 }
 0x198   : > { %2863 = vmatprep.subr.bf16.mxu0 %v3187_v2  ;;  %2860 = vmatmul.mubr.msk.bf16.vlgmr.msra.gmra.mrb[16].mxu1 %vm728_vm3, %v717_v38 }
 0x199   : > { %2870 = vmatpush3.bf16.xpose.msra.mxu1 %v1345_v39  ;;  %2871 = vmatprep.mubr.msk.bf16.mxu1 %vm3188_vm0, %v3187_v2 }
 0x19a   : > { %2881 = vmatprep.subr.bf16.mxu1 %v3187_v2 }
 0x19e   : > { %2854 = vmatmul.mubr.msk.bf16.vlgmr.msra.gmra.mrb[24].mxu0 %vm728_vm3, %v716_v43 }
 0x19f   : > { %2864 = vmatpush3.bf16.xpose.msra.mxu0 %v1294_v44  ;;  %2865 = vmatprep.mubr.msk.bf16.mxu0 %vm3188_vm0, %v3187_v2 }
 0x1a0   : > { %2875 = vmatprep.subr.bf16.mxu0 %v3187_v2  ;;  %2872 = vmatmul.mubr.msk.bf16.vlgmr.msra.gmra.mrb[20].mxu1 %vm728_vm3, %v719_v46 }
 0x1a1   : > { %2882 = vmatpush3.bf16.xpose.msra.mxu1 %v1447_v47  ;;  %2883 = vmatprep.mubr.msk.bf16.mxu1 %vm3188_vm0, %v3187_v2 }
 0x1a2   : > { %2893 = vmatprep.subr.bf16.mxu1 %v3187_v2 }
 0x1a6   : > { %2866 = vmatmul.mubr.msk.bf16.vlgmr.msra.gmra.mrb[28].mxu0 %vm728_vm3, %v718_v51 }
 0x1a7   : > { %2876 = vmatpush3.bf16.xpose.msra.mxu0 %v1396_v52  ;;  %2877 = vmatprep.mubr.msk.bf16.mxu0 %vm3188_vm0, %v3187_v2 }
 0x1a8   : > { %2887 = vmatprep.subr.bf16.mxu0 %v3187_v2  ;;  %2884 = vmatmul.mubr.msk.bf16.vlgmr.msra.gmra.mrb[24].mxu1 %vm728_vm3, %v721_v54 }
 0x1a9   : > { %2894 = vmatpush3.bf16.xpose.msra.mxu1 %v1601_v56  ;;  %2895 = vmatprep.mubr.msk.bf16.mxu1 %vm3188_vm0, %v3187_v2 }
 0x1aa   : > { %2905 = vmatprep.subr.bf16.mxu1 %v3187_v2 }
 0x1ae   : > { %2878 = vmatmul.mubr.msk.bf16.vlgmr.msra.gmra.mrb[32].mxu0 %vm728_vm3, %v720_v57 }
 0x1af   : > { %2888 = vmatpush3.bf16.xpose.msra.mxu0 %v1498_v58  ;;  %2889 = vmatprep.mubr.msk.bf16.mxu0 %vm3188_vm0, %v3187_v2 }
 0x1b0   : > { %2899 = vmatprep.subr.bf16.mxu0 %v3187_v2  ;;  %2896 = vmatmul.mubr.msk.bf16.vlgmr.msra.gmra.mrb[28].mxu1 %vm728_vm3, %v3373_v20 }
 0x1b1   : > { %2906 = vmatpush3.bf16.xpose.msra.mxu1 %v1764_v61  ;;  %2907 = vmatprep.mubr.msk.bf16.mxu1 %vm3188_vm0, %v3187_v2 }
 0x1b2   : > { %2917 = vmatprep.subr.bf16.mxu1 %v3187_v2 }
 0x1b6   : > { %2890 = vmatmul.mubr.msk.bf16.vlgmr.msra.gmra.mrb[36].mxu0 %vm728_vm3, %v722_v62 }
 0x1b7   : > { %2901 = vmatprep.mubr.msk.bf16.mxu0 %vm3188_vm0, %v3187_v2 }
 0x1b8   : > { %2908 = vmatmul.mubr.msk.bf16.vlgmr.msra.gmra.mrb[32].mxu1 %vm728_vm3, %v1727_v0 }
 0x1b9   : > { %2918 = vmatpush3.bf16.xpose.msra.mxu1 %v1919_v1  ;;  %2919 = vmatprep.mubr.msk.bf16.mxu1 %vm3188_vm0, %v3187_v2 }
 0x1ba   : > { %2929 = vmatprep.subr.bf16.mxu1 %v3187_v2 }
 0x1c0   : > { %2920 = vmatmul.mubr.msk.bf16.vlgmr.msra.gmra.mrb[36].mxu1 %vm728_vm3, %v1882_v4 }
 0x1c1   : > { %2930 = vmatpush3.bf16.xpose.msra.mxu1 %v2074_v5  ;;  %2931 = vmatprep.mubr.msk.bf16.mxu1 %vm3188_vm0, %v3187_v2 }
 0x1c2   : > { %2941 = vmatprep.subr.bf16.mxu1 %v3187_v2 }
 0x1c8   : > { %2932 = vmatmul.mubr.msk.bf16.vlgmr.msra.gmra.mrb[40].mxu1 %vm728_vm3, %v2037_v6 }
 0x1c9   : > { %2945 = vmatprep.mubr.msk.bf16.mxu1 %vm3188_vm0, %v3187_v2 }
 0x249   : > { %v769_v7 = vpop.f32.mrb[4].mxu0  ;;  %v871_v10 = vpop.f32.mrb[0].mxu1 }
 0x24a   : > { %v2801_v8 = vpop.f32.mrb[5].mxu0  ;;  %v2813_v13 = vpop.f32.mrb[1].mxu1  ;;  %v1730_v16 = vrot.slane %v769_v7, 1  ;;  %v1885_v17 = vrot.slane %v769_v7, 2  ;;  %v2040_v18 = vrot.slane %v769_v7, 3  ;;  %v1732_v21 = vrot.slane %v871_v10, 7 }
 0x24b   : > { %v772_v9 = vpop.f32.mrb[6].mxu0  ;;  %v874_v14 = vpop.f32.mrb[2].mxu1  ;;  %v1563_v28 = vrot.slane %v871_v10, 6  ;;  %v2043_v31 = vrot.slane %v871_v10, 1 }
 0x24c   : > { %v2802_v11 = vpop.f32.mrb[7].mxu0  ;;  %v2814_v15 = vpop.f32.mrb[3].mxu1 }
 0x251   : > { %v820_v22 = vpop.f32.mrb[8].mxu0 }
 0x252   : > { %v1560_v23 = vrot.slane %v820_v22, 7  ;;  %v1731_v24 = vsel %vm1561_vm4, %v820_v22, %v1730_v16  ;;  %v1886_v25 = vrot.slane %v820_v22, 1  ;;  %v2041_v26 = vrot.slane %v820_v22, 2  ;;  %v2807_v27 = vpop.f32.mrb[9].mxu0 }
 0x253   : > { %v1733_v19 = vsel %vm1564_vm5, %v1732_v21, %v1731_v24  ;;  %v823_v30 = vpop.f32.mrb[10].mxu0  ;;  %v973_v35 = vpop.f32.mrb[4].mxu1 }
 0x254   : > { %v1562_v32 = vsel %vm1561_vm4, %v1560_v23, %v769_v7  ;;  %v1887_v33 = vsel %vm1561_vm4, %v1886_v25, %v1885_v17  ;;  %v2808_v36 = vpop.f32.mrb[11].mxu0  ;;  %v2042_v37 = vsel %vm1561_vm4, %v2041_v26, %v2040_v18  ;;  %v2825_v38 = vpop.f32.mrb[5].mxu1  ;;  %v2046_v43 = vrot.slane %v973_v35, 7 }
 0x255   : > { %v976_v39 = vpop.f32.mrb[6].mxu1  ;;  %v1565_v29 = vsel %vm1564_vm5, %v1563_v28, %v1562_v32  ;;  %v1888_v40 = vsel %vm1564_vm5, %v871_v10, %v1887_v33  ;;  %v2044_v41 = vsel %vm1564_vm5, %v2043_v31, %v2042_v37  ;;  %v1569_v50 = vrot.slane %v973_v35, 4 }
 0x256   : > { %v2826_v42 = vpop.f32.mrb[7].mxu1  ;;  %v1736_v51 = vrot.slane %v973_v35, 5  ;;  %v1891_v54 = vrot.slane %v973_v35, 6 }
 0x259   : > { %v922_v44 = vpop.f32.mrb[12].mxu0 }
 0x25a   : > { %v1566_v45 = vrot.slane %v922_v44, 5  ;;  %v1734_v46 = vrot.slane %v922_v44, 6  ;;  %v1889_v47 = vrot.slane %v922_v44, 7  ;;  %v2045_v48 = vsel %vm1567_vm6, %v922_v44, %v2044_v41  ;;  %v2819_v49 = vpop.f32.mrb[13].mxu0 }
 0x25b   : > { %v2047_v52 = vsel %vm1570_vm7, %v2046_v43, %v2045_v48  ;;  %v925_v53 = vpop.f32.mrb[14].mxu0  ;;  %v1075_v57 = vpop.f32.mrb[8].mxu1 }
 0x25c   : > { %v1568_v55 = vsel %vm1567_vm6, %v1566_v45, %v1565_v29  ;;  %v1735_v34 = vsel %vm1567_vm6, %v1734_v46, %v1733_v19  ;;  %v1890_v56 = vsel %vm1567_vm6, %v1889_v47, %v1888_v40  ;;  %v2820_v58 = vpop.f32.mrb[15].mxu0  ;;  %v2837_v59 = vpop.f32.mrb[9].mxu1  ;;  %v1575_v8 = vrot.slane %v1075_v57, 2 }
 0x25d   : > { %v1078_v60 = vpop.f32.mrb[10].mxu1  ;;  %v1571_v61 = vsel %vm1570_vm7, %v1569_v50, %v1568_v55  ;;  %v1737_v62 = vsel %vm1570_vm7, %v1736_v51, %v1735_v34  ;;  %v1892_v63 = vsel %vm1570_vm7, %v1891_v54, %v1890_v56  ;;  %v1740_v9 = vrot.slane %v1075_v57, 3 }
 0x25e   : > { %v2838_v0 = vpop.f32.mrb[11].mxu1  ;;  %v1895_v10 = vrot.slane %v1075_v57, 4  ;;  %v2050_v11 = vrot.slane %v1075_v57, 5 }
 0x261   : > { %v1024_v1 = vpop.f32.mrb[16].mxu0 }
 0x262   : > { %v1572_v3 = vrot.slane %v1024_v1, 3  ;;  %v1738_v4 = vrot.slane %v1024_v1, 4  ;;  %v1893_v5 = vrot.slane %v1024_v1, 5  ;;  %v2048_v6 = vrot.slane %v1024_v1, 6  ;;  %v2831_v7 = vpop.f32.mrb[17].mxu0 }
 0x263   : > { %v1027_v13 = vpop.f32.mrb[18].mxu0  ;;  %v1177_v14 = vpop.f32.mrb[12].mxu1 }
 0x264   : > { %v2832_v15 = vpop.f32.mrb[19].mxu0  ;;  %v1574_v16 = vsel %vm1573_vm8, %v1572_v3, %v1571_v61  ;;  %v1739_v17 = vsel %vm1573_vm8, %v1738_v4, %v1737_v62  ;;  %v1894_v18 = vsel %vm1573_vm8, %v1893_v5, %v1892_v63  ;;  %v2049_v21 = vsel %vm1573_vm8, %v2048_v6, %v2047_v52  ;;  %v2849_v22 = vpop.f32.mrb[13].mxu1 }
 0x265   : > { %v1577_v23 = vsel %vm1576_vm9, %v1575_v8, %v1574_v16  ;;  %v1180_v24 = vpop.f32.mrb[14].mxu1  ;;  %v1741_v25 = vsel %vm1576_vm9, %v1740_v9, %v1739_v17  ;;  %v1896_v26 = vsel %vm1576_vm9, %v1895_v10, %v1894_v18  ;;  %v2051_v27 = vsel %vm1576_vm9, %v2050_v11, %v2049_v21 }
 0x266   : > { %v2850_v28 = vpop.f32.mrb[15].mxu1  ;;  %v1744_v45 = vrot.slane %v1177_v14, 1  ;;  %v1899_v46 = vrot.slane %v1177_v14, 2  ;;  %v2054_v47 = vrot.slane %v1177_v14, 3 }
 0x269   : > { %v1126_v19 = vpop.f32.mrb[20].mxu0 }
 0x26a   : > { %v1578_v30 = vrot.slane %v1126_v19, 1  ;;  %v1742_v31 = vrot.slane %v1126_v19, 2  ;;  %v1897_v32 = vrot.slane %v1126_v19, 3  ;;  %v2052_v33 = vrot.slane %v1126_v19, 4  ;;  %v2843_v35 = vpop.f32.mrb[21].mxu0 }
 0x26b   : > { %v1129_v36 = vpop.f32.mrb[22].mxu0  ;;  %v1279_v37 = vpop.f32.mrb[16].mxu1 }
 0x26c   : > { %v2844_v38 = vpop.f32.mrb[23].mxu0  ;;  %v3585_v39 = vsel %vm1579_vm10, %v1578_v30, %v1577_v23  ;;  %v3588_v29 = vsel %vm1579_vm10, %v1742_v31, %v1741_v25  ;;  %v3591_v40 = vsel %vm1579_vm10, %v1897_v32, %v1896_v26  ;;  %v3594_v41 = vsel %vm1579_vm10, %v2052_v33, %v2051_v27  ;;  %v2861_v42 = vpop.f32.mrb[17].mxu1 }
 0x26d   : > { %v1282_v43 = vpop.f32.mrb[18].mxu1  ;;  %v1746_v48 = vrot.slane %v1279_v37, 7  ;;  %v1583_v55 = vrot.slane %v1279_v37, 6  ;;  %v2057_v57 = vrot.slane %v1279_v37, 1 }
 0x26e   : > { %v2862_v44 = vpop.f32.mrb[19].mxu1 }
 0x271   : > { %v1228_v49 = vpop.f32.mrb[24].mxu0 }
 0x272   : > { %v1581_v50 = vrot.slane %v1228_v49, 7  ;;  %v1745_v51 = vsel %vm1561_vm4, %v1228_v49, %v1744_v45  ;;  %v1900_v52 = vrot.slane %v1228_v49, 1  ;;  %v2055_v53 = vrot.slane %v1228_v49, 2  ;;  %v2855_v54 = vpop.f32.mrb[25].mxu0 }
 0x273   : > { %v1747_v34 = vsel %vm1564_vm5, %v1746_v48, %v1745_v51  ;;  %v1231_v56 = vpop.f32.mrb[26].mxu0  ;;  %v1381_v60 = vpop.f32.mrb[20].mxu1 }
 0x274   : > { %v1582_v58 = vsel %vm1561_vm4, %v1581_v50, %v1177_v14  ;;  %v1901_v59 = vsel %vm1561_vm4, %v1900_v52, %v1899_v46  ;;  %v2856_v61 = vpop.f32.mrb[27].mxu0  ;;  %v2056_v62 = vsel %vm1561_vm4, %v2055_v53, %v2054_v47  ;;  %v2873_v63 = vpop.f32.mrb[21].mxu1  ;;  %v2060_v6 = vrot.slane %v1381_v60, 7 }
 0x275   : > { %v1384_v0 = vpop.f32.mrb[22].mxu1  ;;  %v1584_v1 = vsel %vm1564_vm5, %v1583_v55, %v1582_v58  ;;  %v1902_v3 = vsel %vm1564_vm5, %v1279_v37, %v1901_v59  ;;  %v2058_v4 = vsel %vm1564_vm5, %v2057_v57, %v2056_v62  ;;  %v1587_v14 = vrot.slane %v1381_v60, 4 }
 0x276   : > { %v2874_v5 = vpop.f32.mrb[23].mxu1  ;;  %v1750_v15 = vrot.slane %v1381_v60, 5  ;;  %v1905_v18 = vrot.slane %v1381_v60, 6 }
 0x279   : > { %v1330_v7 = vpop.f32.mrb[28].mxu0 }
 0x27a   : > { %v1585_v8 = vrot.slane %v1330_v7, 5  ;;  %v1748_v9 = vrot.slane %v1330_v7, 6  ;;  %v1903_v10 = vrot.slane %v1330_v7, 7  ;;  %v2059_v11 = vsel %vm1567_vm6, %v1330_v7, %v2058_v4  ;;  %v2867_v13 = vpop.f32.mrb[29].mxu0 }
 0x27b   : > { %v2061_v16 = vsel %vm1570_vm7, %v2060_v6, %v2059_v11  ;;  %v1333_v17 = vpop.f32.mrb[30].mxu0  ;;  %v1483_v24 = vpop.f32.mrb[24].mxu1 }
 0x27c   : > { %v1586_v21 = vsel %vm1567_vm6, %v1585_v8, %v1584_v1  ;;  %v1749_v22 = vsel %vm1567_vm6, %v1748_v9, %v1747_v34  ;;  %v1904_v23 = vsel %vm1567_vm6, %v1903_v10, %v1902_v3  ;;  %v2868_v25 = vpop.f32.mrb[31].mxu0  ;;  %v2885_v26 = vpop.f32.mrb[25].mxu1  ;;  %v1591_v42 = vrot.slane %v1483_v24, 2 }
 0x27d   : > { %v1486_v27 = vpop.f32.mrb[26].mxu1  ;;  %v1751_v28 = vsel %vm1570_vm7, %v1750_v15, %v1749_v22  ;;  %v1906_v19 = vsel %vm1570_vm7, %v1905_v18, %v1904_v23  ;;  %v1588_v30 = vsel %vm1570_vm7, %v1587_v14, %v1586_v21  ;;  %v1754_v43 = vrot.slane %v1483_v24, 3 }
 0x27e   : > { %v2886_v31 = vpop.f32.mrb[27].mxu1  ;;  %v1909_v44 = vrot.slane %v1483_v24, 4  ;;  %v2064_v45 = vrot.slane %v1483_v24, 5 }
 0x281   : > { %v1432_v32 = vpop.f32.mrb[32].mxu0 }
 0x282   : > { %v1589_v33 = vrot.slane %v1432_v32, 3  ;;  %v1752_v35 = vrot.slane %v1432_v32, 4  ;;  %v1907_v36 = vrot.slane %v1432_v32, 5  ;;  %v2062_v37 = vrot.slane %v1432_v32, 6  ;;  %v2879_v38 = vpop.f32.mrb[33].mxu0 }
 0x283   : > { %v1435_v46 = vpop.f32.mrb[34].mxu0  ;;  %v1637_v47 = vpop.f32.mrb[28].mxu1 }
 0x284   : > { %v2880_v48 = vpop.f32.mrb[35].mxu0  ;;  %v1753_v49 = vsel %vm1573_vm8, %v1752_v35, %v1751_v28  ;;  %v1908_v50 = vsel %vm1573_vm8, %v1907_v36, %v1906_v19  ;;  %v1590_v51 = vsel %vm1573_vm8, %v1589_v33, %v1588_v30  ;;  %v2063_v52 = vsel %vm1573_vm8, %v2062_v37, %v2061_v16  ;;  %v2897_v54 = vpop.f32.mrb[29].mxu1 }
 0x285   : > { %v1638_v53 = vadd.f32 %v1637_v47, %v3585_v39  ;;  %v1755_v55 = vsel %vm1576_vm9, %v1754_v43, %v1753_v49  ;;  %v1910_v34 = vsel %vm1576_vm9, %v1909_v44, %v1908_v50  ;;  %v1592_v56 = vsel %vm1576_vm9, %v1591_v42, %v1590_v51  ;;  %v1640_v57 = vpop.f32.mrb[30].mxu1 }
 0x286   : > { %v2065_v58 = vsel %vm1576_vm9, %v2064_v45, %v2063_v52  ;;  %v2898_v60 = vpop.f32.mrb[31].mxu1 }
 0x287   : > { %v1644_v59 = vmul.f32 0.35355338, %v1638_v53 }
 0x289   : > { %v3624_v61 = vsel %vm1652_vm11, -1e+30, %v1644_v59  ;;  %v1534_v39 = vpop.f32.mrb[36].mxu0 }
 0x28a   : > { %v1656_v62 = vsel %vm1655_vm12, %v3624_v61, -inf  ;;  %v1593_v63 = vrot.slane %v1534_v39, 1  ;;  %v1756_v0 = vrot.slane %v1534_v39, 2  ;;  %v1911_v1 = vrot.slane %v1534_v39, 3  ;;  %v2891_v3 = vpop.f32.mrb[37].mxu0 }
 0x28b   : > { %1657 = vmax.xlane.f32.xlu1 %v1656_v62  ;;  %v2066_v4 = vrot.slane %v1534_v39, 4  ;;  %v1537_v5 = vpop.f32.mrb[38].mxu0  ;;  %v1800_v6 = vpop.f32.mrb[32].mxu1 }
 0x28c   : > { %v1757_v7 = vsel %vm1579_vm10, %v1756_v0, %v1755_v55  ;;  %v2892_v8 = vpop.f32.mrb[39].mxu0  ;;  %v1912_v9 = vsel %vm1579_vm10, %v1911_v1, %v1910_v34  ;;  %v1594_v10 = vsel %vm1579_vm10, %v1593_v63, %v1592_v56  ;;  %v1801_v11 = vadd.f32 %v1800_v6, %v3588_v29  ;;  %v2909_v13 = vpop.f32.mrb[33].mxu1 }
 0x28d   : > { %v1641_v14 = vadd.f32 %v1640_v57, %v1594_v10  ;;  %v2067_v15 = vsel %vm1579_vm10, %v2066_v4, %v2065_v58  ;;  %v1803_v16 = vpop.f32.mrb[34].mxu1 }
 0x28e   : > { %v1807_v17 = vmul.f32 0.35355338, %v1801_v11  ;;  %v1804_v18 = vadd.f32 %v1803_v16, %v1757_v7  ;;  %v2910_v21 = vpop.f32.mrb[35].mxu1 }
 0x28f   : > { %v1645_v22 = vmul.f32 0.35355338, %v1641_v14 }
 0x290   : > { %v1808_v23 = vmul.f32 0.35355338, %v1804_v18  ;;  %v1809_v25 = vsel %vm1652_vm11, -1e+30, %v1807_v17 }
 0x291   : > { %v1654_v24 = vsel %vm1652_vm11, -1e+30, %v1645_v22  ;;  %v1811_v32 = vsel %vm1655_vm12, %v1809_v25, -inf }
 0x292   : > { %v1659_v26 = vsel %vm1655_vm12, %v1654_v24, -inf  ;;  %v1810_v29 = vsel %vm1652_vm11, -1e+30, %v1808_v23 }
 0x293   : > { %1660 = vmax.xlane.f32.xlu0 %v1659_v26  ;;  %v1955_v27 = vpop.f32.mrb[36].mxu1  ;;  %v1814_v28 = vsel %vm1655_vm12, %v1810_v29, -inf }
 0x294   : > { %v1956_v19 = vadd.f32 %v1955_v27, %v3591_v40  ;;  %v2921_v30 = vpop.f32.mrb[37].mxu1  ;;  %1815 = vmax.xlane.f32.xlu1 %v1814_v28 }
 0x295   : > { %v1958_v31 = vpop.f32.mrb[38].mxu1 }
 0x296   : > { %v1962_v33 = vmul.f32 0.35355338, %v1956_v19  ;;  %v1959_v35 = vadd.f32 %v1958_v31, %v1912_v9  ;;  %v2922_v36 = vpop.f32.mrb[39].mxu1 }
 0x297   : > { %1812 = vmax.xlane.f32.xlu0 %v1811_v32 }
 0x298   : > { %v1963_v37 = vmul.f32 0.35355338, %v1959_v35  ;;  %v3645_v38 = vsel %vm1652_vm11, -1e+30, %v1962_v33 }
 0x299   : > { %v1966_v42 = vsel %vm1655_vm12, %v3645_v38, -inf }
 0x29a   : > { %v1965_v40 = vsel %vm1652_vm11, -1e+30, %v1963_v37 }
 0x29b   : > { %1967 = vmax.xlane.f32.xlu0 %v1966_v42  ;;  %v2110_v43 = vpop.f32.mrb[40].mxu1  ;;  %v1969_v44 = vsel %vm1655_vm12, %v1965_v40, -inf }
 0x29c   : > { %v2111_v45 = vadd.f32 %v2110_v43, %v3594_v41  ;;  %v2933_v46 = vpop.f32.mrb[41].mxu1  ;;  %1970 = vmax.xlane.f32.xlu1 %v1969_v44 }
 0x29d   : > { %v2113_v47 = vpop.f32.mrb[42].mxu1 }
 0x29e   : > { %v2117_v48 = vmul.f32 0.35355338, %v2111_v45  ;;  %v2114_v49 = vadd.f32 %v2113_v47, %v2067_v15  ;;  %v2934_v50 = vpop.f32.mrb[43].mxu1 }
 0x2a0   : > { %v2118_v51 = vmul.f32 0.35355338, %v2114_v49  ;;  %v2119_v52 = vsel %vm1652_vm11, -1e+30, %v2117_v48 }
 0x2a1   : > { %v2121_v53 = vsel %vm1655_vm12, %v2119_v52, -inf }
 0x2a2   : > { %2122 = vmax.xlane.f32.xlu0 %v2121_v53  ;;  %v2120_v54 = vsel %vm1652_vm11, -1e+30, %v2118_v51 }
 0x2a3   : > { %v2124_v55 = vsel %vm1655_vm12, %v2120_v54, -inf }
 0x2a4   : > { %2125 = vmax.xlane.f32.xlu1 %v2124_v55 }
 0x2b5   : > { %1834 = vrot.lane.b32.xlu1 %v3373_v20, %s3199_s20 }
 0x318   : > { %v1658_v41 = vpop.xlane.xlu1 %1657 }
 0x319   : > { %v1662_v34 = vsub.f32 %v3624_v61, %v1658_v41 }
 0x31b   : > { %v1664_v56 = vmul.f32 1.442695, %v1662_v34 }
 0x31d   : > { %3081 = vpow2.f32 %v1664_v56 }
 0x320   : > { %v1661_v57 = vpop.xlane.xlu0 %1660 }
 0x321   : > { %v1663_v58 = vsub.f32 %v1654_v24, %v1661_v57  ;;  %v1816_v59 = vpop.xlane.xlu1 %1815 }
 0x322   : > { %v1818_v60 = vsub.f32 %v1810_v29, %v1816_v59 }
 0x323   : > { %v1666_v39 = vmul.f32 1.442695, %v1663_v58 }
 0x324   : > { %v1813_v62 = vpop.xlane.xlu0 %1812  ;;  %v1821_v63 = vmul.f32 1.442695, %v1818_v60 }
 0x325   : > { %3083 = vpow2.f32 %v1666_v39  ;;  %v1817_v12 = vsub.f32 %v1809_v25, %v1813_v62 }
 0x326   : > { %3085 = vpow2.f32 %v1821_v63 }
 0x327   : > { %v3661_v0 = vpop.eup %3081  ;;  %v1819_v1 = vmul.f32 1.442695, %v1817_v12 }
 0x328   : > { %v1668_v3 = vsel %vm1655_vm12, %v3661_v0, 0.0  ;;  %v1968_v22 = vpop.xlane.xlu0 %1967 }
 0x329   : > { %3087 = vpow2.f32 %v1819_v1  ;;  %1669 = vadd.xlane.f32.xlu0 %v1668_v3  ;;  %v1971_v61 = vpop.xlane.xlu1 %1970  ;;  %v1972_v23 = vsub.f32 %v3645_v38, %v1968_v22 }
 0x32a   : > { %v1973_v4 = vsub.f32 %v1965_v40, %v1971_v61 }
 0x32b   : > { %v1974_v25 = vmul.f32 1.442695, %v1972_v23 }
 0x32c   : > { %v1976_v5 = vmul.f32 1.442695, %v1973_v4 }
 0x32e   : > { %3089 = vpow2.f32 %v1976_v5 }
 0x32f   : > { %v3084_v6 = vpop.eup %3083  ;;  %v2123_v24 = vpop.xlane.xlu0 %2122 }
 0x330   : > { %v1671_v7 = vsel %vm1655_vm12, %v3084_v6, 0.0  ;;  %v3086_v8 = vpop.eup %3085  ;;  %v2127_v26 = vsub.f32 %v2119_v52, %v2123_v24 }
 0x331   : > { %1672 = vadd.xlane.f32.xlu1 %v1671_v7  ;;  %v2126_v9 = vpop.xlane.xlu1 %2125  ;;  %v1826_v13 = vsel %vm1655_vm12, %v3086_v8, 0.0  ;;  %v3069_v7 = vld [vmem:[%s3841_s4] sm:$0xff]  }
 0x332   : > { %v2128_v11 = vsub.f32 %v2120_v54, %v2126_v9  ;;  %v2129_v29 = vmul.f32 1.442695, %v2127_v26  ;;  %2942 = vmatpush3.bf16.msra.mxu1 %v3069_v7 }
 0x333   : > { %v3088_v10 = vpop.eup %3087  ;;  %2943 = vmatprep.subr.bf16.mxu1 %v3187_v2 }
 0x334   : > { %v1823_v14 = vsel %vm1655_vm12, %v3088_v10, 0.0  ;;  %v2131_v15 = vmul.f32 1.442695, %v2128_v11 }
 0x335   : > { %1827 = vadd.xlane.f32.xlu1 %v1826_v13  ;;  %1824 = vadd.xlane.f32.xlu0 %v1823_v14  ;;  %v1835_v31 = vpop.permute.xlu1 %1834  ;;  %v3070_v14 = vld [vmem:[%s3841_s4 + $0x8] sm:$0xff]  }
 0x336   : > { %3091 = vpow2.f32 %v2131_v15  ;;  %2944 = vmatpush3.bf16.msra.mxu1 %v3070_v14 }
 0x337   : > { %3093 = vpow2.f32 %v1974_v25  ;;  %2957 = vmatprep.subr.bf16.mxu1 %v3187_v2 }
 0x338   : > { %v3668_v16 = vpop.eup %3089  ;;  %3095 = vpow2.f32 %v2129_v29 }
 0x339   : > { %v1981_v17 = vsel %vm1655_vm12, %v3668_v16, 0.0 }
 0x33a   : > { %1982 = vadd.xlane.f32.xlu1 %v1981_v17 }
 0x340   : > { %v3672_v18 = vpop.eup %3091 }
 0x341   : > { %v2136_v21 = vsel %vm1655_vm12, %v3672_v18, 0.0  ;;  %v3094_v27 = vpop.eup %3093 }
 0x342   : > { %2137 = vadd.xlane.f32.xlu1 %v2136_v21  ;;  %v1978_v28 = vsel %vm1655_vm12, %v3094_v27, 0.0  ;;  %v3096_v19 = vpop.eup %3095 }
 0x343   : > { %v2133_v30 = vsel %vm1655_vm12, %v3096_v19, 0.0 }
 0x34b   : > { %1679 = vrot.lane.b32.xlu0 %v3373_v20, %s3200_s21  ;;  %s442_s21 = sand.u32 1, %s3177_s26  }
 0x34c   : > { %s3795_s29 = scalar_lea.sflag [#allocation3], %s442_s21 }
 0x353   : > { %1989 = vrot.lane.b32.xlu1 %v3373_v20, %s3201_s22  ;;  %s3204_s22 = smov 16  }
 0x36a   : > { %1979 = vadd.xlane.f32.xlu0 %v1978_v28 }
 0x36e   : > { %2134 = vadd.xlane.f32.xlu0 %v2133_v30 }
 0x384   : > { %2144 = vrot.lane.b32.xlu0 %v3373_v20, %s3202_s24  ;;  %s3205_s24 = smov 24  }
 0x3b6   : > { %v1670_v32 = vpop.xlane.xlu0 %1669 }
 0x3b7   : > { %3097 = vrcp.f32 %v1670_v32 }
 0x3be   : > { %v1673_v33 = vpop.xlane.xlu1 %1672 }
 0x3bf   : > { %3099 = vrcp.f32 %v1673_v33 }
 0x3c1   : > { %v3098_v38 = vpop.eup %3097 }
 0x3c2   : > { %v1828_v35 = vpop.xlane.xlu1 %1827  ;;  %v1825_v36 = vpop.xlane.xlu0 %1824  ;;  %v1676_v40 = vmul.f32 %v3098_v38, %v3661_v0 }
 0x3c3   : > { %3101 = vrcp.f32 %v1828_v35 }
 0x3c4   : > { %3103 = vrcp.f32 %v1825_v36 }
 0x3c6   : > { %v1680_v37 = vpop.permute.xlu0 %1679 }
 0x3c7   : > { %2900 = vmatpush3.bf16.msra.mxu0 %v1680_v37  ;;  %v1983_v44 = vpop.xlane.xlu1 %1982 }
 0x3c8   : > { %2911 = vmatprep.subr.bf16.mxu0 %v3187_v2  ;;  %3105 = vrcp.f32 %v1983_v44 }
 0x3c9   : > { %v3100_v42 = vpop.eup %3099 }
 0x3ca   : > { %v1677_v43 = vmul.f32 %v3100_v42, %v3084_v6  ;;  %v3121_v42 = vld [vmem:[%s3350_s23] sm:$0xff] }
 0x3cc   : > { %v1678_v20 = vpack.c.bf16 %v1677_v43, %v1676_v40 }
 0x3cd   : > { %v3102_v45 = vpop.eup %3101 }
 0x3ce   : > { %v3104_v46 = vpop.eup %3103  ;;  %2902 = vmatmul.mubr.msk.bf16.vlgmr.msra.gmra.mrb[40].mxu0 %vm1655_vm12, %v1678_v20  ;;  %v1832_v47 = vmul.f32 %v3102_v45, %v3086_v8  ;;  %v3122_v20 = vld [vmem:[%s3350_s23 + $0x8] sm:$0xff] }
 0x3cf   : > { %2912 = vmatpush3.bf16.msra.mxu0 %v1835_v31  ;;  %2913 = vmatprep.mubr.msk.bf16.mxu0 %vm3188_vm0, %v3187_v2  ;;  %v1831_v48 = vmul.f32 %v3104_v46, %v3088_v10  ;;  %v2138_v49 = vpop.xlane.xlu1 %2137 }
 0x3d0   : > { %2923 = vmatprep.subr.bf16.mxu0 %v3187_v2 }
 0x3d1   : > { %v1833_v50 = vpack.c.bf16 %v1832_v47, %v1831_v48 }
 0x3d2   : > { %v3106_v54 = vpop.eup %3105 }
 0x3d3   : > { %v1990_v51 = vpop.permute.xlu1 %1989  ;;  %v1987_v41 = vmul.f32 %v3106_v54, %v3668_v16 }
 0x3d6   : > { %2914 = vmatmul.mubr.msk.bf16.vlgmr.msra.gmra.mrb[44].mxu0 %vm1655_vm12, %v1833_v50 }
 0x3d7   : > { %2924 = vmatpush3.bf16.msra.mxu0 %v1990_v51  ;;  %2925 = vmatprep.mubr.msk.bf16.mxu0 %vm3188_vm0, %v3187_v2 }
 0x3d8   : > { %2935 = vmatprep.subr.bf16.mxu0 %v3187_v2 }
 0x3f7   : > { %v1980_v52 = vpop.xlane.xlu0 %1979 }
 0x3f8   : > { %3107 = vrcp.f32 %v1980_v52 }
 0x3fb   : > { %v2135_v53 = vpop.xlane.xlu0 %2134 }
 0x3fc   : > { %3109 = vrcp.f32 %v2135_v53 }
 0x3fd   : > { %3111 = vrcp.f32 %v2138_v49 }
 0x3ff   : > { %v2145_v58 = vpop.permute.xlu0 %2144 }
 0x402   : > { %v3108_v55 = vpop.eup %3107 }
 0x403   : > { %v1986_v34 = vmul.f32 %v3108_v55, %v3094_v27 }
 0x405   : > { %v1988_v56 = vpack.c.bf16 %v1987_v41, %v1986_v34 }
 0x406   : > { %v3110_v57 = vpop.eup %3109 }
 0x407   : > { %2926 = vmatmul.mubr.msk.bf16.vlgmr.msra.gmra.mrb[48].mxu0 %vm1655_vm12, %v1988_v56  ;;  %v3112_v59 = vpop.eup %3111  ;;  %v2141_v60 = vmul.f32 %v3110_v57, %v3096_v19  ;;  %v3071_v57 = vld [vmem:[%s3844_s7] sm:$0xff]  }
 0x408   : > { %2936 = vmatpush3.bf16.msra.mxu0 %v2145_v58  ;;  %2937 = vmatprep.mubr.msk.bf16.mxu0 %vm3188_vm0, %v3187_v2  ;;  %v2142_v39 = vmul.f32 %v3112_v59, %v3672_v18  ;;  %v3072_v58 = vld [vmem:[%s3844_s7 + $0x8] sm:$0xff]   ;;  %v3073_v59 = vld [vmem:[%s3846_s9] sm:$0xff]  }
 0x409   : > { %2949 = vmatprep.subr.bf16.mxu0 %v3187_v2 }
 0x40a   : > { %v2143_v62 = vpack.c.bf16 %v2142_v39, %v2141_v60  ;;  %v3074_v60 = vld [vmem:[%s3846_s9 + $0x8] sm:$0xff]   ;;  %v3075_v39 = vld [vmem:[%s3846_s9 + $0x10] sm:$0xff]  }
 0x40f   : > { %2938 = vmatmul.mubr.msk.bf16.vlgmr.msra.gmra.mrb[52].mxu0 %vm1655_vm12, %v2143_v62  ;;  %v3076_v62 = vld [vmem:[%s3846_s9 + $0x18] sm:$0xff]  }
 0x410   : > { %2953 = vmatprep.mubr.msk.bf16.mxu0 %vm3188_vm0, %v3187_v2  ;;  %2950 = vmatpush3.bf16.msra.mxu0 %v3071_v57 }
 0x411   : > { %2951 = vmatprep.subr.bf16.mxu0 %v3187_v2 }
 0x414   : > { %2952 = vmatpush3.bf16.msra.mxu0 %v3072_v58  ;;  %v2714_v58 = vld [vmem:[%s3848_s11] ss:$0 sm:$0xff] }
 0x4a1   : > { %v1719_v63 = vpop.f32.mrb[40].mxu0 }
 0x4a2   : > { %v2903_v12 = vpop.f32.mrb[41].mxu0 }
 0x4a3   : > { %v1722_v0 = vpop.f32.mrb[42].mxu0  ;;  %v3078_v12 = vld [vmem:[%s3846_s9 + $0x28] sm:$0xff]  }
 0x4a4   : > { %v2904_v1 = vpop.f32.mrb[43].mxu0 }
 0x4a9   : > { %v1874_v3 = vpop.f32.mrb[44].mxu0 }
 0x4aa   : > { %v2915_v61 = vpop.f32.mrb[45].mxu0 }
 0x4ab   : > { %v1877_v4 = vpop.f32.mrb[46].mxu0 }
 0x4ac   : > { %v3036_v5 = vpack.i.bf16 %v1877_v4, %v1874_v3  ;;  %v2916_v6 = vpop.f32.mrb[47].mxu0 }
 0x4ae   : > { %3037 = vrot.lane.b32.xlu1 %v3036_v5, %s3851_s30  ;;  %s2650_s30 = sshll.u32 %s442_s21, 4 }
 0x4af   : > { %s444_s20 = scalar_lea.vmem [#allocation2], %s2650_s30 }
 0x4b0   : > { %s2575_s0 = sshll.u32 %s444_s20, 4  ;;  %s3792_s0 = int_to_ptr.vmem [resolvable:$true] %s2575_s0 }
 0x4b1   : > { %s3123_s30 = scalar_lea.vmem %s3792_s0, 256  ;;  %p3130_p0 = scmp.lt.s32.totalorder %s3792_s0, %s3128_s2 }
 0x4b2   : > { %p3124_p11 = scmp.ne.s32.totalorder %s3792_s0, %s3123_s30 }
 0x4b4   : > { %p3125_p12 = pnand %p3124_p11, %p3316_p5 }
 0x4b6   : > { %p3126_p13 = pneg %p3125_p12 }
 0x4da   : > { %v2029_v8 = vpop.f32.mrb[48].mxu0 }
 0x4db   : > { %v2927_v9 = vpop.f32.mrb[49].mxu0 }
 0x4dc   : > { %v2032_v10 = vpop.f32.mrb[50].mxu0 }
 0x4dd   : > { %v3041_v11 = vpack.i.bf16 %v2032_v10, %v2029_v8  ;;  %v2928_v13 = vpop.f32.mrb[51].mxu0  ;;  %v2699_v8 = vld [vmem:[%s3842_s5] ss:$0 sm:$0xff] }
 0x4de   : > { %v2700_v13 = vld [vmem:[%s3843_s6] ss:$0 sm:$0xff] }
 0x4df   : > { %3042 = vrot.lane.b32.xlu0 %v3041_v11, %s3204_s22  ;;  %s3129_s22 = scalar_lea.vmem %s3128_s2, 512 }
 0x4e0   : > { %p3131_p1 = scmp.lt.s32.totalorder %s3129_s22, %s3123_s30 }
 0x4e2   : > { %v2184_v15 = vpop.f32.mrb[52].mxu0  ;;  %p3132_p2 = por %p3131_p1, %p3130_p0 }
 0x4e3   : > { %v2939_v16 = vpop.f32.mrb[53].mxu0 }
 0x4e4   : > { %v2187_v17 = vpop.f32.mrb[54].mxu0  ;;  %p3133_p3 = pnand %p3132_p2, %p3126_p13 }
 0x4e5   : > { %v3046_v18 = vpack.i.bf16 %v2187_v17, %v2184_v15  ;;  %v2940_v21 = vpop.f32.mrb[55].mxu0 }
 0x4e6   : > { %v3080_v21 = vld [vmem:[%s3846_s9 + $0x38] sm:$0xff]  }
 0x4e7   : > { %3047 = vrot.lane.b32.xlu1 %v3046_v18, %s3205_s24  ;;  %v3079_v18 = vld [vmem:[%s3846_s9 + $0x30] sm:$0xff]  }
 0x520   : > { %v3038_v22 = vpop.permute.xlu1 %3037 }
 0x521   : > { %v3040_v24 = vunpack.i.h.bf16 %v3038_v22  ;;  %v3039_v25 = vunpack.i.l.bf16 %v3038_v22  ;;  %v2701_v22 = vld [vmem:[%s3845_s8] ss:$0 sm:$0xff] }
 0x523   : > { %v2216_v28 = vsel %vm728_vm3, %v1722_v0, %v3040_v24  ;;  %v2215_v19 = vsel %vm728_vm3, %v1719_v63, %v3039_v25  ;;  %v3077_v63 = vld [vmem:[%s3846_s9 + $0x20] sm:$0xff]  }
 0x551   : > { %v3043_v23 = vpop.permute.xlu0 %3042 }
 0x552   : > { %v3045_v26 = vunpack.i.h.bf16 %v3043_v23  ;;  %v3044_v29 = vunpack.i.l.bf16 %v3043_v23 }
 0x554   : > { %v2218_v32 = vsel %vm1655_vm12, %v2216_v28, %v3045_v26  ;;  %v2217_v33 = vsel %vm1655_vm12, %v2215_v19, %v3044_v29 }
 0x559   : > { %v3048_v27 = vpop.permute.xlu1 %3047 }
 0x55a   : > { %v3050_v30 = vunpack.i.h.bf16 %v3048_v27  ;;  %v3049_v31 = vunpack.i.l.bf16 %v3048_v27 }
 0x55c   : > { %v2221_v35 = vsel %vm2219_vm13, %v2218_v32, %v3050_v30  ;;  %v2220_v36 = vsel %vm2219_vm13, %v2217_v33, %v3049_v31 }
 0x55d   : > { %v2222_v37 = vpack.c.bf16 %v2221_v35, %v2220_v36 }
 0x55f   : > { %2946 = vmatmul.mubr.msk.bf16.vlgmr.msra.gmra.mrb[44].mxu1 %vm473_vm1, %v2222_v37 }
 0x560   : > { %2973 = vmatprep.mubr.msk.bf16.mxu1 %vm3188_vm0, %v3187_v2  ;;  %2958 = vmatpush3.bf16.msra.mxu1 %v3073_v59 }
 0x561   : > { %2959 = vmatprep.subr.bf16.mxu1 %v3187_v2 }
 0x564   : > { %2960 = vmatpush3.bf16.msra.mxu1 %v3074_v60 }
 0x565   : > { %2961 = vmatprep.subr.bf16.mxu1 %v3187_v2 }
 0x568   : > { %2962 = vmatpush3.bf16.msra.mxu1 %v3075_v39  ;;  %v2715_v39 = vld [vmem:[%s3849_s12] ss:$0 sm:$0xff] }
 0x569   : > { %2963 = vmatprep.subr.bf16.mxu1 %v3187_v2 }
 0x56c   : > { %2964 = vmatpush3.bf16.msra.mxu1 %v3076_v62 }
 0x56d   : > { %2965 = vmatprep.subr.bf16.mxu1 %v3187_v2 }
 0x570   : > { %2966 = vmatpush3.bf16.msra.mxu1 %v3077_v63 }
 0x571   : > { %2967 = vmatprep.subr.bf16.mxu1 %v3187_v2 }
 0x574   : > { %2968 = vmatpush3.bf16.msra.mxu1 %v3078_v12 }
 0x575   : > { %2969 = vmatprep.subr.bf16.mxu1 %v3187_v2 }
 0x578   : > { %2970 = vmatpush3.bf16.msra.mxu1 %v3079_v18 }
 0x579   : > { %2971 = vmatprep.subr.bf16.mxu1 %v3187_v2  ;;  %v2705_v2 = vld [vmem:[%s3847_s10] ss:$0 sm:$0xff] }
 0x57c   : > { %2972 = vmatpush3.bf16.msra.mxu1 %v3080_v21 }
 0x632   : > { %v2276_v38 = vpop.f32.mrb[44].mxu1 }
 0x633   : > { %v2283_v40 = vadd.f32 %v3121_v42, %v2276_v38  ;;  %v2947_v43 = vpop.f32.mrb[45].mxu1 }
 0x634   : > { %v2279_v44 = vpop.f32.mrb[46].mxu1 }
 0x635   : > { %v2284_v45 = vadd.f32 %v3122_v20, %v2279_v44  ;;  %v2948_v46 = vpop.f32.mrb[47].mxu1  ;;  %v2285_v47 = vsel %vm473_vm1, %v2283_v40, 0.0 }
 0x636   : > { %2286 = vadd.xlane.f32.xlu0 %v2285_v47 }
 0x637   : > { %v2288_v48 = vsel %vm473_vm1, %v2284_v45, 0.0 }
 0x638   : > { %2289 = vadd.xlane.f32.xlu1 %v2288_v48 }
 0x6c3   : > { %v2287_v49 = vpop.xlane.xlu0 %2286 }
 0x6c4   : > { %v2292_v50 = vmul.f32 0.03125, %v2287_v49 }
 0x6c5   : > { %v2290_v51 = vpop.xlane.xlu1 %2289 }
 0x6c6   : > { %v2294_v52 = vsub.f32 %v2283_v40, %v2292_v50  ;;  %v2293_v53 = vmul.f32 0.03125, %v2290_v51 }
 0x6c8   : > { %v2295_v54 = vsub.f32 %v2284_v45, %v2293_v53  ;;  %v2296_v55 = vmul.f32 %v2294_v52, %v2294_v52 }
 0x6ca   : > { %v2298_v41 = vsel %vm473_vm1, %v2296_v55, 0.0  ;;  %v2297_v34 = vmul.f32 %v2295_v54, %v2295_v54 }
 0x6cb   : > { %2299 = vadd.xlane.f32.xlu0 %v2298_v41 }
 0x6cc   : > { %v2301_v56 = vsel %vm473_vm1, %v2297_v34, 0.0 }
 0x6cf   : > { %2302 = vadd.xlane.f32.xlu0 %v2301_v56 }
 0x758   : > { %v2300_v0 = vpop.xlane.xlu0 %2299 }
 0x759   : > { %v2304_v1 = vmul.f32 0.03125, %v2300_v0 }
 0x75b   : > { %v2306_v3 = vadd.f32 1e-05, %v2304_v1 }
 0x75c   : > { %v2303_v61 = vpop.xlane.xlu0 %2302 }
 0x75d   : > { %3113 = vrsqrt.f32 %v2306_v3  ;;  %v2305_v4 = vmul.f32 0.03125, %v2303_v61 }
 0x75f   : > { %v2307_v5 = vadd.f32 1e-05, %v2305_v4 }
 0x761   : > { %3115 = vrsqrt.f32 %v2307_v5 }
 0x767   : > { %v3114_v6 = vpop.eup %3113 }
 0x768   : > { %v2310_v7 = vmul.f32 %v3114_v6, %v2294_v52 }
 0x76a   : > { %v2319_v10 = vmul.f32 %v2699_v8, %v2310_v7 }
 0x76b   : > { %v3116_v9 = vpop.eup %3115 }
 0x76c   : > { %v2311_v11 = vmul.f32 %v3116_v9, %v2295_v54  ;;  %v2328_v15 = vadd.f32 %v2700_v13, %v2319_v10 }
 0x76e   : > { %v2320_v14 = vmul.f32 %v2699_v8, %v2311_v11 }
 0x770   : > { %v2329_v16 = vadd.f32 %v2700_v13, %v2320_v14 }
 0x772   : > { %v2330_v17 = vpack.c.bf16 %v2329_v16, %v2328_v15 }
 0x774   : > { %2954 = vmatmul.mubr.msk.bf16.vlgmr.msra.gmra.mrb[56].mxu0 %vm473_vm1, %v2330_v17 }
 0x847   : > { %v2391_v23 = vpop.f32.mrb[56].mxu0 }
 0x848   : > { %v2392_v24 = vadd.f32 %v2701_v22, %v2391_v23  ;;  %v2955_v25 = vpop.f32.mrb[57].mxu0 }
 0x849   : > { %v2394_v26 = vpop.f32.mrb[58].mxu0 }
 0x84a   : > { %v2395_v29 = vadd.f32 %v2701_v22, %v2394_v26  ;;  %v2956_v27 = vpop.f32.mrb[59].mxu0  ;;  %v2398_v28 = vmax.f32 %v2392_v24, 0.0 }
 0x84c   : > { %v2399_v19 = vmax.f32 %v2395_v29, 0.0 }
 0x84e   : > { %v2400_v30 = vpack.c.bf16 %v2399_v19, %v2398_v28 }
 0x850   : > { %2974 = vmatmul.mubr.bf16.vlgmr.msra.gmra.mrb[48].mxu1 %v2400_v30 }
 0x923   : > { %v2506_v31 = vpop.f32.mrb[48].mxu1 }
 0x924   : > { %v2507_v32 = vadd.f32 %v2705_v2, %v2506_v31  ;;  %v2975_v33 = vpop.f32.mrb[49].mxu1 }
 0x925   : > { %v2509_v35 = vpop.f32.mrb[50].mxu1 }
 0x926   : > { %v2510_v36 = vadd.f32 %v2705_v2, %v2509_v35  ;;  %v2976_v37 = vpop.f32.mrb[51].mxu1  ;;  %v2513_v38 = vadd.f32 %v2507_v32, %v2328_v15 }
 0x928   : > { %v2515_v42 = vsel %vm473_vm1, %v2513_v38, 0.0  ;;  %v2514_v40 = vadd.f32 %v2510_v36, %v2329_v16 }
 0x929   : > { %2516 = vadd.xlane.f32.xlu1 %v2515_v42 }
 0x92a   : > { %v2518_v43 = vsel %vm473_vm1, %v2514_v40, 0.0 }
 0x92b   : > { %2519 = vadd.xlane.f32.xlu0 %v2518_v43 }
 0x9b6   : > { %v2517_v44 = vpop.xlane.xlu1 %2516 }
 0x9b7   : > { %v2521_v20 = vmul.f32 0.03125, %v2517_v44 }
 0x9b8   : > { %v2520_v45 = vpop.xlane.xlu0 %2519 }
 0x9b9   : > { %v2523_v46 = vsub.f32 %v2513_v38, %v2521_v20  ;;  %v2522_v47 = vmul.f32 0.03125, %v2520_v45 }
 0x9bb   : > { %v2524_v48 = vsub.f32 %v2514_v40, %v2522_v47  ;;  %v2525_v49 = vmul.f32 %v2523_v46, %v2523_v46 }
 0x9bd   : > { %v2527_v50 = vsel %vm473_vm1, %v2525_v49, 0.0  ;;  %v2526_v51 = vmul.f32 %v2524_v48, %v2524_v48 }
 0x9be   : > { %2528 = vadd.xlane.f32.xlu1 %v2527_v50 }
 0x9bf   : > { %v2530_v52 = vsel %vm473_vm1, %v2526_v51, 0.0 }
 0x9c0   : > { %2531 = vadd.xlane.f32.xlu0 %v2530_v52 }
 0xa4b   : > { %v2529_v53 = vpop.xlane.xlu1 %2528 }
 0xa4c   : > { %v2533_v54 = vmul.f32 0.03125, %v2529_v53 }
 0xa4d   : > { %v2532_v55 = vpop.xlane.xlu0 %2531 }
 0xa4e   : > { %v2535_v41 = vadd.f32 1e-05, %v2533_v54  ;;  %v2534_v34 = vmul.f32 0.03125, %v2532_v55 }
 0xa50   : > { %3117 = vrsqrt.f32 %v2535_v41  ;;  %v2536_v56 = vadd.f32 1e-05, %v2534_v34 }
 0xa52   : > { %3119 = vrsqrt.f32 %v2536_v56 }
 0xa5a   : > { %v3118_v57 = vpop.eup %3117 }
 0xa5b   : > { %v2539_v59 = vmul.f32 %v3118_v57, %v2523_v46 }
 0xa5c   : > { %v3120_v60 = vpop.eup %3119 }
 0xa5d   : > { %v2548_v62 = vmul.f32 %v2714_v58, %v2539_v59  ;;  %v2540_v63 = vmul.f32 %v3120_v60, %v2524_v48 }
 0xa5f   : > { %v2557_v12 = vadd.f32 %v2715_v39, %v2548_v62  ;;  %v2549_v0 = vmul.f32 %v2714_v58, %v2540_v63 }
 0xa61   : > { %v2558_v1 = vadd.f32 %v2715_v39, %v2549_v0  ;;  %2559 = vst.msk [vmem:[%s444_s20] sm:$0xff] %vm473_vm1, %v2557_v12 }
 0xa63   : > { %2560 = vst.msk [vmem:[%s444_s20 + $0x8] sm:$0xff] %vm473_vm1, %v2558_v1 }
 0xa64   : > { %3136 = shalt.err (!%p3133_p3)
}
 0xa65   : > { %s3137_s21 = scalar_lea.hbm %s3789_s3, 256  ;;  %s3141_s15 = scalar_lea.hbm %s3850_s13, 512 }
 0xa66   : > { %p3138_p4 = scmp.ne.s32.totalorder %s3789_s3, %s3137_s21  ;;  %p3142_p9 = scmp.lt.u32.totalorder %s3789_s3, %s3850_s13 }
 0xa67   : > { %p3143_p10 = scmp.lt.u32.totalorder %s3141_s15, %s3137_s21  ;;  %p3145_p12 = scmp.lt.u32.totalorder %s3137_s21, %s3789_s3 }
 0xa68   : > { %p3139_p7 = pnand %p3138_p4, %p3316_p5 }
 0xa69   : > { %p3144_p11 = por %p3143_p10, %p3142_p9 }
 0xa6a   : > { %p3140_p8 = pneg %p3139_p7 }
 0xa6b   : > { %p3146_p13 = por %p3145_p12, %p3144_p11 }
 0xa6d   : > { %p3147_p0 = pnand %p3146_p13, %p3140_p8 }
 0xa6f   : > { %3150 = shalt.err (!%p3147_p0)
}
 0xa70   : > { %s3207_s30 = smov 128   ;;  %s3862_s1 = smov 8  }
 0xa71   : > { %2977 = dma.vmem_to_hbm [thread:$0]  (%p3316_p5), %s3792_s0, 256, %s3789_s3, %s3795_s29, %s3207_s30, %s3207_s30, %s3862_s1  }
 0xa72 PF: > { %p2983_p1 = scmp.ge.s32.totalorder %s3185_s28, 2  ;;  %s2590_s2 = sand.u32 1, %s3173_s25  }
 0xa73   : > { %s2591_s22 = scalar_lea.sflag [#allocation3], %s2590_s2 }
 0xa74   : > { %p2980_p2 = pnand %p2983_p1, %p3320_p6 }
 0xa76   : > { %3168 = dma.done.wait (!%p2980_p2), %s2591_s22, 256  }
 0xa77   : > { %3170 = vsyncadd (!%p2980_p2), %s2591_s22, 4294967040  ;;  %p23_p3 = scmp.ge.s32.totalorder %s3303_s14, 4   ;;  %s3863_s25 = smov %s3177_s26 }
 0xa78   : > { %s3864_s26 = smov %s3181_s27  ;;  %s3865_s27 = smov %s3314_s17 }
 0xa79   : > { %s3866_s28 = smov %s3303_s14  ;;  %25 = sbr.rel (!%p23_p3) target bundleno = 8 (0x8), region = 110 }
 0xa80   :  { %2596 = vsyncpa [#allocation3], 1 }
 0xa81   :  { %2598 = vsyncpa [#allocation3 + $0x1], 1 }

</bundles_post_ra>
